<compile_context>
chip_gen: v7x
topology: tpu7x:2x2x1
jax: 0.10.0
libtpu: 0.0.40
codegen_flags: <defaults>
</compile_context>

<pallas_src>
import math

import jax
import jax.numpy as jnp
from jax import lax
from jax.experimental import pallas as pl
from jax.experimental.pallas import tpu as pltpu

# ---------------- small, deterministic configuration ----------------
HIDDEN_DIM = 32          # transformer_dim (config['hidden_dim'])
NHEADS = 4               # config['nheads']
HEAD_DIM = HIDDEN_DIM // NHEADS
DIM_FF = 64              # config['dim_feedforward']
NUM_NEIGHBORS = 6        # config['num_neighbors']
SEQ = NUM_NEIGHBORS + 2  # query + neighbors + learned token
NUM_LAYERS = 2           # num_t_encoder_layers == num_rot_encoder_layers
REG_HIDDEN = 64          # PoseRegressor hidden width (original: 1024)
LN_EPS = 1e-5
BATCH = 2
NUM_BRANCHES = 2         # x branch, q branch
X_OUT_DIM = 3
Q_OUT_DIM = 4
OUT_PAD = 128            # lane-dense padded regressor output width


# ---------------------------- kernel helpers ----------------------------
def _layernorm(x, w, b):
    mu = jnp.mean(x, axis=-1, keepdims=True)
    var = jnp.mean((x - mu) ** 2, axis=-1, keepdims=True)
    return (x - mu) * lax.rsqrt(var + LN_EPS) * w + b


def _gelu(x):
    # exact (erf-based) GELU, matching torch.nn.functional.gelu default
    return 0.5 * x * (1.0 + lax.erf(x * (1.0 / math.sqrt(2.0))))


def _fused_branch_kernel(src_ref, pos_ref,
                         qkv_w_ref, qkv_b_ref, ow_ref, ob_ref,
                         l1w_ref, l1b_ref, l2w_ref, l2b_ref,
                         n1w_ref, n1b_ref, n2w_ref, n2b_ref,
                         fnw_ref, fnb_ref,
                         rw1_ref, rb1_ref, rw2_ref, rb2_ref,
                         out_ref):
    """One grid step = one branch (x or q); processes the whole batch."""
    d = HIDDEN_DIM
    num_layers = qkv_w_ref.shape[1]

    # (B, SEQ, D) + (SEQ, D) -> flattened rows (B*SEQ, D)
    x = (src_ref[0] + pos_ref[0]).reshape(BATCH * SEQ, d)

    def split_heads(m3):
        # (B, SEQ, D) -> (NHEADS*B, SEQ, HEAD_DIM), head-major along axis 0.
        # Heads are stacked into the leading batch axis so both attention
        # contractions are single 3D batched einsums (no 4D transposes).
        return jnp.concatenate(
            [m3[:, :, h * HEAD_DIM:(h + 1) * HEAD_DIM] for h in range(NHEADS)],
            axis=0)

    for l in range(num_layers):
        # ---- multi-head self attention (post-norm layer) ----
        # NOTE: 1/sqrt(head_dim) is pre-folded into the Q rows of qkv_w/qkv_b.
        qkv = jnp.dot(x, qkv_w_ref[0, l],
                      preferred_element_type=jnp.float32) + qkv_b_ref[0, l]  # (B*SEQ, 3D)
        q3 = qkv[:, 0:d].reshape(BATCH, SEQ, d)
        k3 = qkv[:, d:2 * d].reshape(BATCH, SEQ, d)
        v3 = qkv[:, 2 * d:3 * d].reshape(BATCH, SEQ, d)

        qh, kh, vh = split_heads(q3), split_heads(k3), split_heads(v3)

        s = jnp.einsum('bqd,bkd->bqk', qh, kh,
                       preferred_element_type=jnp.float32)                   # (H*B, SEQ, SEQ)
        s = s - jnp.max(s, axis=-1, keepdims=True)
        p = jnp.exp(s)
        p = p * pl.reciprocal(jnp.sum(p, axis=-1, keepdims=True), approx=True)
        o = jnp.einsum('bqk,bkd->bqd', p, vh,
                       preferred_element_type=jnp.float32)                   # (H*B, SEQ, Hd)

        # merge heads back onto the lane axis in PyTorch head order
        attn = jnp.concatenate(
            [o[h * BATCH:(h + 1) * BATCH] for h in range(NHEADS)], axis=-1)  # (B, SEQ, D)
        attn = attn.reshape(BATCH * SEQ, d)
        attn = jnp.dot(attn, ow_ref[0, l],
                       preferred_element_type=jnp.float32) + ob_ref[0, l]

        x = _layernorm(x + attn, n1w_ref[0, l], n1b_ref[0, l])

        # ---- feed-forward (linear1 -> gelu -> linear2), dropout = identity ----
        h1 = _gelu(jnp.dot(x, l1w_ref[0, l],
                           preferred_element_type=jnp.float32) + l1b_ref[0, l])
        ff = jnp.dot(h1, l2w_ref[0, l],
                     preferred_element_type=jnp.float32) + l2b_ref[0, l]
        x = _layernorm(x + ff, n2w_ref[0, l], n2b_ref[0, l])

    # Pick sequence position 0 (query position) per batch element, then apply
    # the final encoder LayerNorm only to those rows (LN is row-local, so the
    # order of select/normalize is equivalent and cheaper).
    tok = x.reshape(BATCH, SEQ, d)[:, 0, :]                                   # (B, D)
    tok = _layernorm(tok, fnw_ref[0], fnb_ref[0])

    # PoseRegressor: fc_h -> gelu -> fc_o (fc_o zero-padded to OUT_PAD lanes)
    hr = _gelu(jnp.dot(tok, rw1_ref[0],
                       preferred_element_type=jnp.float32) + rb1_ref[0])
    out = jnp.dot(hr, rw2_ref[0],
                  preferred_element_type=jnp.float32) + rb2_ref[0]            # (B, OUT_PAD)
    out_ref[0] = out.astype(out_ref.dtype)


# ---------------------------- pallas wrapper ----------------------------
def _pose_pallas(src_stacked, pos_stacked, params):
    """Single pallas_call: grid over the two branches (x, q)."""
    in_specs = [
        pl.BlockSpec((1, BATCH, SEQ, HIDDEN_DIM), lambda i: (i, 0, 0, 0)),
        pl.BlockSpec((1, SEQ, HIDDEN_DIM), lambda i: (i, 0, 0)),
    ]
    operands = [src_stacked, pos_stacked]
    for p in params:
        nd = p.ndim
        in_specs.append(
            pl.BlockSpec((1,) + p.shape[1:],
                         lambda i, _nd=nd: (i,) + (0,) * (_nd - 1)))
        operands.append(p)

    return pl.pallas_call(
        _fused_branch_kernel,
        out_shape=jax.ShapeDtypeStruct((NUM_BRANCHES, BATCH, OUT_PAD), jnp.float32),
        grid=(NUM_BRANCHES,),
        in_specs=in_specs,
        out_specs=pl.BlockSpec((1, BATCH, OUT_PAD), lambda i: (i, 0, 0)),
        compiler_params=pltpu.CompilerParams(
            dimension_semantics=("parallel",)),   # 2 TCs on v7x; harmless elsewhere
    )(*operands)


# ---------------------------- parameter setup ----------------------------
def _init_branch_params(key, out_dim):
    """Deterministic synthetic weights, stored in right-multiply (W.T) layout."""
    keys = jax.random.split(key, 12)
    d, f, h, L = HIDDEN_DIM, DIM_FF, REG_HIDDEN, NUM_LAYERS
    sc = 0.08

    def rn(k, shape):
        return (sc * jax.random.normal(k, shape)).astype(jnp.float32)

    # Attention in_proj: fold the 1/sqrt(head_dim) softmax scale into the Q
    # section (columns [0:d]) once at init.  scale*(xW_q + b_q) == x(scale*W_q)
    # + scale*b_q, so kernel math is unchanged but one in-kernel vmul is gone.
    att_scale = 1.0 / math.sqrt(HEAD_DIM)
    qkv_w = rn(keys[0], (L, d, 3 * d))
    qkv_b = rn(keys[1], (L, 1, 3 * d))
    qkv_w = qkv_w.at[:, :, :d].multiply(att_scale)
    qkv_b = qkv_b.at[:, :, :d].multiply(att_scale)

    # regressor output weights zero-padded to the lane-dense OUT_PAD width
    rw2 = jnp.pad(rn(keys[10], (h, out_dim)), ((0, 0), (0, OUT_PAD - out_dim)))
    rb2 = jnp.pad(rn(keys[11], (1, out_dim)), ((0, 0), (0, OUT_PAD - out_dim)))

    return [
        qkv_w,                                      # attn in_proj weight.T (Q pre-scaled)
        qkv_b,                                      # attn in_proj bias     (Q pre-scaled)
        rn(keys[2], (L, d, d)),                     # attn out_proj weight.T
        rn(keys[3], (L, 1, d)),                     # attn out_proj bias
        rn(keys[4], (L, d, f)),                     # linear1 weight.T
        rn(keys[5], (L, 1, f)),                     # linear1 bias
        rn(keys[6], (L, f, d)),                     # linear2 weight.T
        rn(keys[7], (L, 1, d)),                     # linear2 bias
        jnp.ones((L, 1, d), jnp.float32),           # norm1 weight
        jnp.zeros((L, 1, d), jnp.float32),          # norm1 bias
        jnp.ones((L, 1, d), jnp.float32),           # norm2 weight
        jnp.zeros((L, 1, d), jnp.float32),          # norm2 bias
        jnp.ones((1, d), jnp.float32),              # encoder final norm weight
        jnp.zeros((1, d), jnp.float32),             # encoder final norm bias
        rn(keys[8], (d, h)),                        # PoseRegressor fc_h weight.T
        rn(keys[9], (1, h)),                        # PoseRegressor fc_h bias
        rw2,                                        # PoseRegressor fc_o weight.T (padded)
        rb2,                                        # PoseRegressor fc_o bias (padded)
    ]


def init_weights(key):
    kx, kq, kt, kp = jax.random.split(key, 4)
    ktx, ktq = jax.random.split(kt, 2)
    kpx, kpq = jax.random.split(kp, 2)
    px = _init_branch_params(kx, X_OUT_DIM)
    pq = _init_branch_params(kq, Q_OUT_DIM)
    return {
        # per-branch weights stacked along a leading branch axis
        "params": [jnp.stack([a, b], axis=0) for a, b in zip(px, pq)],
        "x_token": 0.1 * jax.random.normal(ktx, (HIDDEN_DIM,), jnp.float32),
        "q_token": 0.1 * jax.random.normal(ktq, (HIDDEN_DIM,), jnp.float32),
        # positional embeddings, stacked (branch, SEQ, D)
        "pos": jnp.stack(
            [jax.random.normal(kpx, (SEQ, HIDDEN_DIM), jnp.float32),
             jax.random.normal(kpq, (SEQ, HIDDEN_DIM), jnp.float32)], axis=0),
    }


# ---------------------------- forward pass ----------------------------
def pose_prior_transformer_forward(query_latent_x, ref_latent_x,
                                   query_latent_q, ref_latent_q, weights):
    def build_src(query, refs, token):
        bsz = query.shape[0]
        refs = refs.reshape(bsz, NUM_NEIGHBORS, HIDDEN_DIM)
        tok = jnp.broadcast_to(token[None, None, :], (bsz, 1, HIDDEN_DIM))
        # per-batch sequence: [query_i, neighbors_i..., learned token]
        return jnp.concatenate([query[:, None, :], refs, tok], axis=1)  # (B, SEQ, D)

    src = jnp.stack(
        [build_src(query_latent_x, ref_latent_x, weights["x_token"]),
         build_src(query_latent_q, ref_latent_q, weights["q_token"])], axis=0)

    out = _pose_pallas(src, weights["pos"], weights["params"])  # (2, B, OUT_PAD)
    x = out[0, :, :X_OUT_DIM]
    q = out[1, :, :Q_OUT_DIM]
    return {"pose": jnp.concatenate([x, q], axis=1)}


# ------------------------------- main -------------------------------
if __name__ == "__main__":
    key = jax.random.PRNGKey(0)
    k1, k2, k3, k4, kw = jax.random.split(key, 5)

    query_latent_x = jax.random.normal(k1, (BATCH, HIDDEN_DIM), jnp.float32)
    ref_latent_x = jax.random.normal(k2, (BATCH * NUM_NEIGHBORS, HIDDEN_DIM), jnp.float32)
    query_latent_q = jax.random.normal(k3, (BATCH, HIDDEN_DIM), jnp.float32)
    ref_latent_q = jax.random.normal(k4, (BATCH * NUM_NEIGHBORS, HIDDEN_DIM), jnp.float32)

    weights = init_weights(kw)

    out = pose_prior_transformer_forward(query_latent_x, ref_latent_x,
                                         query_latent_q, ref_latent_q, weights)
    pose = jax.block_until_ready(out["pose"])
    assert pose.shape == (BATCH, 7), pose.shape
    assert bool(jnp.all(jnp.isfinite(pose)))
    print("KERNEL_OK")
</pallas_src>

<mosaic_0001>
module attributes {stable_mosaic.version = 11 : i64} {
  func.func @_fused_branch_kernel(%arg0: i32, %arg1: memref<1x2x8x32xf32, #tpu.memory_space<vmem>>, %arg2: memref<1x8x32xf32, #tpu.memory_space<vmem>>, %arg3: memref<1x2x32x96xf32, #tpu.memory_space<vmem>>, %arg4: memref<1x2x1x96xf32, #tpu.memory_space<vmem>>, %arg5: memref<1x2x32x32xf32, #tpu.memory_space<vmem>>, %arg6: memref<1x2x1x32xf32, #tpu.memory_space<vmem>>, %arg7: memref<1x2x32x64xf32, #tpu.memory_space<vmem>>, %arg8: memref<1x2x1x64xf32, #tpu.memory_space<vmem>>, %arg9: memref<1x2x64x32xf32, #tpu.memory_space<vmem>>, %arg10: memref<1x2x1x32xf32, #tpu.memory_space<vmem>>, %arg11: memref<1x2x1x32xf32, #tpu.memory_space<vmem>>, %arg12: memref<1x2x1x32xf32, #tpu.memory_space<vmem>>, %arg13: memref<1x2x1x32xf32, #tpu.memory_space<vmem>>, %arg14: memref<1x2x1x32xf32, #tpu.memory_space<vmem>>, %arg15: memref<1x1x32xf32, #tpu.memory_space<vmem>>, %arg16: memref<1x1x32xf32, #tpu.memory_space<vmem>>, %arg17: memref<1x32x64xf32, #tpu.memory_space<vmem>>, %arg18: memref<1x1x64xf32, #tpu.memory_space<vmem>>, %arg19: memref<1x64x128xf32, #tpu.memory_space<vmem>>, %arg20: memref<1x1x128xf32, #tpu.memory_space<vmem>>, %arg21: memref<1x2x128xf32, #tpu.memory_space<vmem>>) attributes {dimension_semantics = [#tpu.dimension_semantics<parallel>], iteration_bounds = array<i64: 2>, scalar_prefetch = 0 : i64, scratch_operands = 0 : i64, tpu.core_type = #tpu.core_type<tc>, window_params = [{transform_indices = @transform_0, window_bounds = array<i64: 1, 2, 8, 32>}, {transform_indices = @transform_1, window_bounds = array<i64: 1, 8, 32>}, {transform_indices = @transform_2, window_bounds = array<i64: 1, 2, 32, 96>}, {transform_indices = @transform_3, window_bounds = array<i64: 1, 2, 1, 96>}, {transform_indices = @transform_4, window_bounds = array<i64: 1, 2, 32, 32>}, {transform_indices = @transform_5, window_bounds = array<i64: 1, 2, 1, 32>}, {transform_indices = @transform_6, window_bounds = array<i64: 1, 2, 32, 64>}, {transform_indices = @transform_7, window_bounds = array<i64: 1, 2, 1, 64>}, {transform_indices = @transform_8, window_bounds = array<i64: 1, 2, 64, 32>}, {transform_indices = @transform_9, window_bounds = array<i64: 1, 2, 1, 32>}, {transform_indices = @transform_10, window_bounds = array<i64: 1, 2, 1, 32>}, {transform_indices = @transform_11, window_bounds = array<i64: 1, 2, 1, 32>}, {transform_indices = @transform_12, window_bounds = array<i64: 1, 2, 1, 32>}, {transform_indices = @transform_13, window_bounds = array<i64: 1, 2, 1, 32>}, {transform_indices = @transform_14, window_bounds = array<i64: 1, 1, 32>}, {transform_indices = @transform_15, window_bounds = array<i64: 1, 1, 32>}, {transform_indices = @transform_16, window_bounds = array<i64: 1, 32, 64>}, {transform_indices = @transform_17, window_bounds = array<i64: 1, 1, 64>}, {transform_indices = @transform_18, window_bounds = array<i64: 1, 64, 128>}, {transform_indices = @transform_19, window_bounds = array<i64: 1, 1, 128>}, {transform_indices = @transform_20, window_bounds = array<i64: 1, 2, 128>}]} {
    %c0 = arith.constant 0 : index
    %c0_0 = arith.constant 0 : index
    %c0_1 = arith.constant 0 : index
    %c0_2 = arith.constant 0 : index
    %0 = vector.load %arg1[%c0, %c0_0, %c0_1, %c0_2] : memref<1x2x8x32xf32, #tpu.memory_space<vmem>>, vector<1x2x8x32xf32>
    %1 = vector.shape_cast %0 : vector<1x2x8x32xf32> to vector<2x8x32xf32>
    %c0_3 = arith.constant 0 : index
    %c0_4 = arith.constant 0 : index
    %c0_5 = arith.constant 0 : index
    %2 = vector.load %arg2[%c0_3, %c0_4, %c0_5] : memref<1x8x32xf32, #tpu.memory_space<vmem>>, vector<1x8x32xf32>
    %3 = vector.shape_cast %2 : vector<1x8x32xf32> to vector<8x32xf32>
    %4 = vector.shape_cast %3 : vector<8x32xf32> to vector<1x8x32xf32>
    %5 = vector.broadcast %4 : vector<1x8x32xf32> to vector<2x8x32xf32>
    %6 = arith.addf %1, %5 : vector<2x8x32xf32>
    %7 = vector.shape_cast %6 : vector<2x8x32xf32> to vector<16x32xf32>
    %c0_6 = arith.constant 0 : index
    %c0_7 = arith.constant 0 : index
    %c0_8 = arith.constant 0 : index
    %c0_9 = arith.constant 0 : index
    %8 = vector.load %arg3[%c0_6, %c0_7, %c0_8, %c0_9] : memref<1x2x32x96xf32, #tpu.memory_space<vmem>>, vector<1x1x32x96xf32>
    %9 = vector.shape_cast %8 : vector<1x1x32x96xf32> to vector<32x96xf32>
    %cst = arith.constant dense<0.000000e+00> : vector<16x96xf32>
    %10 = tpu.matmul %7, %9, %cst {dimension_numbers = #tpu.dot_dimension_numbers<[1], [0], [0], [1], [0, 0, 1, 1], [], []>} : vector<16x32xf32>, vector<32x96xf32>, vector<16x96xf32> -> vector<16x96xf32>
    %c0_10 = arith.constant 0 : index
    %c0_11 = arith.constant 0 : index
    %c0_12 = arith.constant 0 : index
    %c0_13 = arith.constant 0 : index
    %11 = vector.load %arg4[%c0_10, %c0_11, %c0_12, %c0_13] : memref<1x2x1x96xf32, #tpu.memory_space<vmem>>, vector<1x1x1x96xf32>
    %12 = vector.shape_cast %11 : vector<1x1x1x96xf32> to vector<1x96xf32>
    %13 = vector.broadcast %12 : vector<1x96xf32> to vector<16x96xf32>
    %14 = arith.addf %10, %13 : vector<16x96xf32>
    %15 = vector.extract_strided_slice %14 {offsets = [0, 0], sizes = [16, 32], strides = [1, 1]} : vector<16x96xf32> to vector<16x32xf32>
    %16 = vector.shape_cast %15 : vector<16x32xf32> to vector<2x8x32xf32>
    %17 = vector.extract_strided_slice %14 {offsets = [0, 32], sizes = [16, 32], strides = [1, 1]} : vector<16x96xf32> to vector<16x32xf32>
    %18 = vector.shape_cast %17 : vector<16x32xf32> to vector<2x8x32xf32>
    %19 = vector.extract_strided_slice %14 {offsets = [0, 64], sizes = [16, 32], strides = [1, 1]} : vector<16x96xf32> to vector<16x32xf32>
    %20 = vector.shape_cast %19 : vector<16x32xf32> to vector<2x8x32xf32>
    %21 = vector.extract_strided_slice %16 {offsets = [0, 0, 0], sizes = [2, 8, 8], strides = [1, 1, 1]} : vector<2x8x32xf32> to vector<2x8x8xf32>
    %22 = vector.extract_strided_slice %16 {offsets = [0, 0, 8], sizes = [2, 8, 8], strides = [1, 1, 1]} : vector<2x8x32xf32> to vector<2x8x8xf32>
    %23 = vector.extract_strided_slice %16 {offsets = [0, 0, 16], sizes = [2, 8, 8], strides = [1, 1, 1]} : vector<2x8x32xf32> to vector<2x8x8xf32>
    %24 = vector.extract_strided_slice %16 {offsets = [0, 0, 24], sizes = [2, 8, 8], strides = [1, 1, 1]} : vector<2x8x32xf32> to vector<2x8x8xf32>
    %25 = tpu.concatenate %21, %22, %23, %24 in 0 : vector<2x8x8xf32>, vector<2x8x8xf32>, vector<2x8x8xf32>, vector<2x8x8xf32> -> vector<8x8x8xf32>
    %26 = vector.extract_strided_slice %18 {offsets = [0, 0, 0], sizes = [2, 8, 8], strides = [1, 1, 1]} : vector<2x8x32xf32> to vector<2x8x8xf32>
    %27 = vector.extract_strided_slice %18 {offsets = [0, 0, 8], sizes = [2, 8, 8], strides = [1, 1, 1]} : vector<2x8x32xf32> to vector<2x8x8xf32>
    %28 = vector.extract_strided_slice %18 {offsets = [0, 0, 16], sizes = [2, 8, 8], strides = [1, 1, 1]} : vector<2x8x32xf32> to vector<2x8x8xf32>
    %29 = vector.extract_strided_slice %18 {offsets = [0, 0, 24], sizes = [2, 8, 8], strides = [1, 1, 1]} : vector<2x8x32xf32> to vector<2x8x8xf32>
    %30 = tpu.concatenate %26, %27, %28, %29 in 0 : vector<2x8x8xf32>, vector<2x8x8xf32>, vector<2x8x8xf32>, vector<2x8x8xf32> -> vector<8x8x8xf32>
    %31 = vector.extract_strided_slice %20 {offsets = [0, 0, 0], sizes = [2, 8, 8], strides = [1, 1, 1]} : vector<2x8x32xf32> to vector<2x8x8xf32>
    %32 = vector.extract_strided_slice %20 {offsets = [0, 0, 8], sizes = [2, 8, 8], strides = [1, 1, 1]} : vector<2x8x32xf32> to vector<2x8x8xf32>
    %33 = vector.extract_strided_slice %20 {offsets = [0, 0, 16], sizes = [2, 8, 8], strides = [1, 1, 1]} : vector<2x8x32xf32> to vector<2x8x8xf32>
    %34 = vector.extract_strided_slice %20 {offsets = [0, 0, 24], sizes = [2, 8, 8], strides = [1, 1, 1]} : vector<2x8x32xf32> to vector<2x8x8xf32>
    %35 = tpu.concatenate %31, %32, %33, %34 in 0 : vector<2x8x8xf32>, vector<2x8x8xf32>, vector<2x8x8xf32>, vector<2x8x8xf32> -> vector<8x8x8xf32>
    "tpu.trace_start"() <{level = 10 : i32, message = "bqd,bkd->bqk"}> : () -> ()
    %cst_14 = arith.constant dense<0.000000e+00> : vector<8x8x8xf32>
    %36 = tpu.matmul %25, %30, %cst_14 {dimension_numbers = #tpu.dot_dimension_numbers<[2], [2], [1], [1], [0, 0, 0, 1, 1, 1], [0], [0]>} : vector<8x8x8xf32>, vector<8x8x8xf32>, vector<8x8x8xf32> -> vector<8x8x8xf32>
    "tpu.trace_stop"() : () -> ()
    %cst_15 = arith.constant dense<0xFF800000> : vector<8x8xf32>
    %37 = vector.multi_reduction <maximumf>, %36, %cst_15 [2] : vector<8x8x8xf32> to vector<8x8xf32>
    %38 = vector.shape_cast %37 : vector<8x8xf32> to vector<8x8x1xf32>
    %39 = vector.broadcast %38 : vector<8x8x1xf32> to vector<8x8x8xf32>
    %40 = arith.subf %36, %39 : vector<8x8x8xf32>
    %41 = math.exp %40 : vector<8x8x8xf32>
    %cst_16 = arith.constant dense<0.000000e+00> : vector<8x8xf32>
    %42 = vector.multi_reduction <add>, %41, %cst_16 [2] : vector<8x8x8xf32> to vector<8x8xf32>
    %43 = vector.shape_cast %42 : vector<8x8xf32> to vector<8x8x1xf32>
    %44 = tpu.reciprocal %43 {approx = true} : vector<8x8x1xf32> -> vector<8x8x1xf32>
    %45 = vector.broadcast %44 : vector<8x8x1xf32> to vector<8x8x8xf32>
    %46 = arith.mulf %41, %45 : vector<8x8x8xf32>
    "tpu.trace_start"() <{level = 10 : i32, message = "bqk,bkd->bqd"}> : () -> ()
    %cst_17 = arith.constant dense<0.000000e+00> : vector<8x8x8xf32>
    %47 = tpu.matmul %46, %35, %cst_17 {dimension_numbers = #tpu.dot_dimension_numbers<[2], [1], [1], [2], [0, 0, 0, 1, 1, 2], [0], [0]>} : vector<8x8x8xf32>, vector<8x8x8xf32>, vector<8x8x8xf32> -> vector<8x8x8xf32>
    "tpu.trace_stop"() : () -> ()
    %48 = vector.extract_strided_slice %47 {offsets = [0, 0, 0], sizes = [2, 8, 8], strides = [1, 1, 1]} : vector<8x8x8xf32> to vector<2x8x8xf32>
    %49 = vector.extract_strided_slice %47 {offsets = [2, 0, 0], sizes = [2, 8, 8], strides = [1, 1, 1]} : vector<8x8x8xf32> to vector<2x8x8xf32>
    %50 = vector.extract_strided_slice %47 {offsets = [4, 0, 0], sizes = [2, 8, 8], strides = [1, 1, 1]} : vector<8x8x8xf32> to vector<2x8x8xf32>
    %51 = vector.extract_strided_slice %47 {offsets = [6, 0, 0], sizes = [2, 8, 8], strides = [1, 1, 1]} : vector<8x8x8xf32> to vector<2x8x8xf32>
    %52 = tpu.concatenate %48, %49, %50, %51 in 2 : vector<2x8x8xf32>, vector<2x8x8xf32>, vector<2x8x8xf32>, vector<2x8x8xf32> -> vector<2x8x32xf32>
    %53 = vector.shape_cast %52 : vector<2x8x32xf32> to vector<16x32xf32>
    %c0_18 = arith.constant 0 : index
    %c0_19 = arith.constant 0 : index
    %c0_20 = arith.constant 0 : index
    %c0_21 = arith.constant 0 : index
    %54 = vector.load %arg5[%c0_18, %c0_19, %c0_20, %c0_21] : memref<1x2x32x32xf32, #tpu.memory_space<vmem>>, vector<1x1x32x32xf32>
    %55 = vector.shape_cast %54 : vector<1x1x32x32xf32> to vector<32x32xf32>
    %cst_22 = arith.constant dense<0.000000e+00> : vector<16x32xf32>
    %56 = tpu.matmul %53, %55, %cst_22 {dimension_numbers = #tpu.dot_dimension_numbers<[1], [0], [0], [1], [0, 0, 1, 1], [], []>} : vector<16x32xf32>, vector<32x32xf32>, vector<16x32xf32> -> vector<16x32xf32>
    %c0_23 = arith.constant 0 : index
    %c0_24 = arith.constant 0 : index
    %c0_25 = arith.constant 0 : index
    %c0_26 = arith.constant 0 : index
    %57 = vector.load %arg6[%c0_23, %c0_24, %c0_25, %c0_26] : memref<1x2x1x32xf32, #tpu.memory_space<vmem>>, vector<1x1x1x32xf32>
    %58 = vector.shape_cast %57 : vector<1x1x1x32xf32> to vector<1x32xf32>
    %59 = vector.broadcast %58 : vector<1x32xf32> to vector<16x32xf32>
    %60 = arith.addf %56, %59 : vector<16x32xf32>
    %61 = arith.addf %7, %60 : vector<16x32xf32>
    %c0_27 = arith.constant 0 : index
    %c0_28 = arith.constant 0 : index
    %c0_29 = arith.constant 0 : index
    %c0_30 = arith.constant 0 : index
    %62 = vector.load %arg11[%c0_27, %c0_28, %c0_29, %c0_30] : memref<1x2x1x32xf32, #tpu.memory_space<vmem>>, vector<1x1x1x32xf32>
    %63 = vector.shape_cast %62 : vector<1x1x1x32xf32> to vector<1x32xf32>
    %c0_31 = arith.constant 0 : index
    %c0_32 = arith.constant 0 : index
    %c0_33 = arith.constant 0 : index
    %c0_34 = arith.constant 0 : index
    %64 = vector.load %arg12[%c0_31, %c0_32, %c0_33, %c0_34] : memref<1x2x1x32xf32, #tpu.memory_space<vmem>>, vector<1x1x1x32xf32>
    %65 = vector.shape_cast %64 : vector<1x1x1x32xf32> to vector<1x32xf32>
    %cst_35 = arith.constant dense<0.000000e+00> : vector<16xf32>
    %66 = vector.multi_reduction <add>, %61, %cst_35 [1] : vector<16x32xf32> to vector<16xf32>
    %67 = vector.shape_cast %66 : vector<16xf32> to vector<16x1xf32>
    %cst_36 = arith.constant 3.200000e+01 : f32
    %68 = vector.broadcast %cst_36 : f32 to vector<16x1xf32>
    %69 = arith.divf %67, %68 : vector<16x1xf32>
    %70 = vector.broadcast %69 : vector<16x1xf32> to vector<16x32xf32>
    %71 = arith.subf %61, %70 : vector<16x32xf32>
    %72 = arith.mulf %71, %71 : vector<16x32xf32>
    %cst_37 = arith.constant dense<0.000000e+00> : vector<16xf32>
    %73 = vector.multi_reduction <add>, %72, %cst_37 [1] : vector<16x32xf32> to vector<16xf32>
    %74 = vector.shape_cast %73 : vector<16xf32> to vector<16x1xf32>
    %cst_38 = arith.constant 3.200000e+01 : f32
    %75 = vector.broadcast %cst_38 : f32 to vector<16x1xf32>
    %76 = arith.divf %74, %75 : vector<16x1xf32>
    %77 = vector.broadcast %69 : vector<16x1xf32> to vector<16x32xf32>
    %78 = arith.subf %61, %77 : vector<16x32xf32>
    %cst_39 = arith.constant 9.99999974E-6 : f32
    %79 = vector.broadcast %cst_39 : f32 to vector<16x1xf32>
    %80 = arith.addf %76, %79 : vector<16x1xf32>
    %81 = math.rsqrt %80 : vector<16x1xf32>
    %82 = vector.broadcast %81 : vector<16x1xf32> to vector<16x32xf32>
    %83 = arith.mulf %78, %82 : vector<16x32xf32>
    %84 = vector.broadcast %63 : vector<1x32xf32> to vector<16x32xf32>
    %85 = arith.mulf %83, %84 : vector<16x32xf32>
    %86 = vector.broadcast %65 : vector<1x32xf32> to vector<16x32xf32>
    %87 = arith.addf %85, %86 : vector<16x32xf32>
    %c0_40 = arith.constant 0 : index
    %c0_41 = arith.constant 0 : index
    %c0_42 = arith.constant 0 : index
    %c0_43 = arith.constant 0 : index
    %88 = vector.load %arg7[%c0_40, %c0_41, %c0_42, %c0_43] : memref<1x2x32x64xf32, #tpu.memory_space<vmem>>, vector<1x1x32x64xf32>
    %89 = vector.shape_cast %88 : vector<1x1x32x64xf32> to vector<32x64xf32>
    %cst_44 = arith.constant dense<0.000000e+00> : vector<16x64xf32>
    %90 = tpu.matmul %87, %89, %cst_44 {dimension_numbers = #tpu.dot_dimension_numbers<[1], [0], [0], [1], [0, 0, 1, 1], [], []>} : vector<16x32xf32>, vector<32x64xf32>, vector<16x64xf32> -> vector<16x64xf32>
    %c0_45 = arith.constant 0 : index
    %c0_46 = arith.constant 0 : index
    %c0_47 = arith.constant 0 : index
    %c0_48 = arith.constant 0 : index
    %91 = vector.load %arg8[%c0_45, %c0_46, %c0_47, %c0_48] : memref<1x2x1x64xf32, #tpu.memory_space<vmem>>, vector<1x1x1x64xf32>
    %92 = vector.shape_cast %91 : vector<1x1x1x64xf32> to vector<1x64xf32>
    %93 = vector.broadcast %92 : vector<1x64xf32> to vector<16x64xf32>
    %94 = arith.addf %90, %93 : vector<16x64xf32>
    %cst_49 = arith.constant 5.000000e-01 : f32
    %95 = vector.broadcast %cst_49 : f32 to vector<16x64xf32>
    %96 = arith.mulf %95, %94 : vector<16x64xf32>
    %cst_50 = arith.constant 0.707106769 : f32
    %97 = vector.broadcast %cst_50 : f32 to vector<16x64xf32>
    %98 = arith.mulf %94, %97 : vector<16x64xf32>
    %99 = math.erf %98 : vector<16x64xf32>
    %cst_51 = arith.constant 1.000000e+00 : f32
    %100 = vector.broadcast %cst_51 : f32 to vector<16x64xf32>
    %101 = arith.addf %100, %99 : vector<16x64xf32>
    %102 = arith.mulf %96, %101 : vector<16x64xf32>
    %c0_52 = arith.constant 0 : index
    %c0_53 = arith.constant 0 : index
    %c0_54 = arith.constant 0 : index
    %c0_55 = arith.constant 0 : index
    %103 = vector.load %arg9[%c0_52, %c0_53, %c0_54, %c0_55] : memref<1x2x64x32xf32, #tpu.memory_space<vmem>>, vector<1x1x64x32xf32>
    %104 = vector.shape_cast %103 : vector<1x1x64x32xf32> to vector<64x32xf32>
    %cst_56 = arith.constant dense<0.000000e+00> : vector<16x32xf32>
    %105 = tpu.matmul %102, %104, %cst_56 {dimension_numbers = #tpu.dot_dimension_numbers<[1], [0], [0], [1], [0, 0, 1, 1], [], []>} : vector<16x64xf32>, vector<64x32xf32>, vector<16x32xf32> -> vector<16x32xf32>
    %c0_57 = arith.constant 0 : index
    %c0_58 = arith.constant 0 : index
    %c0_59 = arith.constant 0 : index
    %c0_60 = arith.constant 0 : index
    %106 = vector.load %arg10[%c0_57, %c0_58, %c0_59, %c0_60] : memref<1x2x1x32xf32, #tpu.memory_space<vmem>>, vector<1x1x1x32xf32>
    %107 = vector.shape_cast %106 : vector<1x1x1x32xf32> to vector<1x32xf32>
    %108 = vector.broadcast %107 : vector<1x32xf32> to vector<16x32xf32>
    %109 = arith.addf %105, %108 : vector<16x32xf32>
    %110 = arith.addf %87, %109 : vector<16x32xf32>
    %c0_61 = arith.constant 0 : index
    %c0_62 = arith.constant 0 : index
    %c0_63 = arith.constant 0 : index
    %c0_64 = arith.constant 0 : index
    %111 = vector.load %arg13[%c0_61, %c0_62, %c0_63, %c0_64] : memref<1x2x1x32xf32, #tpu.memory_space<vmem>>, vector<1x1x1x32xf32>
    %112 = vector.shape_cast %111 : vector<1x1x1x32xf32> to vector<1x32xf32>
    %c0_65 = arith.constant 0 : index
    %c0_66 = arith.constant 0 : index
    %c0_67 = arith.constant 0 : index
    %c0_68 = arith.constant 0 : index
    %113 = vector.load %arg14[%c0_65, %c0_66, %c0_67, %c0_68] : memref<1x2x1x32xf32, #tpu.memory_space<vmem>>, vector<1x1x1x32xf32>
    %114 = vector.shape_cast %113 : vector<1x1x1x32xf32> to vector<1x32xf32>
    %cst_69 = arith.constant dense<0.000000e+00> : vector<16xf32>
    %115 = vector.multi_reduction <add>, %110, %cst_69 [1] : vector<16x32xf32> to vector<16xf32>
    %116 = vector.shape_cast %115 : vector<16xf32> to vector<16x1xf32>
    %cst_70 = arith.constant 3.200000e+01 : f32
    %117 = vector.broadcast %cst_70 : f32 to vector<16x1xf32>
    %118 = arith.divf %116, %117 : vector<16x1xf32>
    %119 = vector.broadcast %118 : vector<16x1xf32> to vector<16x32xf32>
    %120 = arith.subf %110, %119 : vector<16x32xf32>
    %121 = arith.mulf %120, %120 : vector<16x32xf32>
    %cst_71 = arith.constant dense<0.000000e+00> : vector<16xf32>
    %122 = vector.multi_reduction <add>, %121, %cst_71 [1] : vector<16x32xf32> to vector<16xf32>
    %123 = vector.shape_cast %122 : vector<16xf32> to vector<16x1xf32>
    %cst_72 = arith.constant 3.200000e+01 : f32
    %124 = vector.broadcast %cst_72 : f32 to vector<16x1xf32>
    %125 = arith.divf %123, %124 : vector<16x1xf32>
    %126 = vector.broadcast %118 : vector<16x1xf32> to vector<16x32xf32>
    %127 = arith.subf %110, %126 : vector<16x32xf32>
    %cst_73 = arith.constant 9.99999974E-6 : f32
    %128 = vector.broadcast %cst_73 : f32 to vector<16x1xf32>
    %129 = arith.addf %125, %128 : vector<16x1xf32>
    %130 = math.rsqrt %129 : vector<16x1xf32>
    %131 = vector.broadcast %130 : vector<16x1xf32> to vector<16x32xf32>
    %132 = arith.mulf %127, %131 : vector<16x32xf32>
    %133 = vector.broadcast %112 : vector<1x32xf32> to vector<16x32xf32>
    %134 = arith.mulf %132, %133 : vector<16x32xf32>
    %135 = vector.broadcast %114 : vector<1x32xf32> to vector<16x32xf32>
    %136 = arith.addf %134, %135 : vector<16x32xf32>
    %c0_74 = arith.constant 0 : index
    %c1 = arith.constant 1 : index
    %c0_75 = arith.constant 0 : index
    %c0_76 = arith.constant 0 : index
    %137 = vector.load %arg3[%c0_74, %c1, %c0_75, %c0_76] : memref<1x2x32x96xf32, #tpu.memory_space<vmem>>, vector<1x1x32x96xf32>
    %138 = vector.shape_cast %137 : vector<1x1x32x96xf32> to vector<32x96xf32>
    %cst_77 = arith.constant dense<0.000000e+00> : vector<16x96xf32>
    %139 = tpu.matmul %136, %138, %cst_77 {dimension_numbers = #tpu.dot_dimension_numbers<[1], [0], [0], [1], [0, 0, 1, 1], [], []>} : vector<16x32xf32>, vector<32x96xf32>, vector<16x96xf32> -> vector<16x96xf32>
    %c0_78 = arith.constant 0 : index
    %c1_79 = arith.constant 1 : index
    %c0_80 = arith.constant 0 : index
    %c0_81 = arith.constant 0 : index
    %140 = vector.load %arg4[%c0_78, %c1_79, %c0_80, %c0_81] : memref<1x2x1x96xf32, #tpu.memory_space<vmem>>, vector<1x1x1x96xf32>
    %141 = vector.shape_cast %140 : vector<1x1x1x96xf32> to vector<1x96xf32>
    %142 = vector.broadcast %141 : vector<1x96xf32> to vector<16x96xf32>
    %143 = arith.addf %139, %142 : vector<16x96xf32>
    %144 = vector.extract_strided_slice %143 {offsets = [0, 0], sizes = [16, 32], strides = [1, 1]} : vector<16x96xf32> to vector<16x32xf32>
    %145 = vector.shape_cast %144 : vector<16x32xf32> to vector<2x8x32xf32>
    %146 = vector.extract_strided_slice %143 {offsets = [0, 32], sizes = [16, 32], strides = [1, 1]} : vector<16x96xf32> to vector<16x32xf32>
    %147 = vector.shape_cast %146 : vector<16x32xf32> to vector<2x8x32xf32>
    %148 = vector.extract_strided_slice %143 {offsets = [0, 64], sizes = [16, 32], strides = [1, 1]} : vector<16x96xf32> to vector<16x32xf32>
    %149 = vector.shape_cast %148 : vector<16x32xf32> to vector<2x8x32xf32>
    %150 = vector.extract_strided_slice %145 {offsets = [0, 0, 0], sizes = [2, 8, 8], strides = [1, 1, 1]} : vector<2x8x32xf32> to vector<2x8x8xf32>
    %151 = vector.extract_strided_slice %145 {offsets = [0, 0, 8], sizes = [2, 8, 8], strides = [1, 1, 1]} : vector<2x8x32xf32> to vector<2x8x8xf32>
    %152 = vector.extract_strided_slice %145 {offsets = [0, 0, 16], sizes = [2, 8, 8], strides = [1, 1, 1]} : vector<2x8x32xf32> to vector<2x8x8xf32>
    %153 = vector.extract_strided_slice %145 {offsets = [0, 0, 24], sizes = [2, 8, 8], strides = [1, 1, 1]} : vector<2x8x32xf32> to vector<2x8x8xf32>
    %154 = tpu.concatenate %150, %151, %152, %153 in 0 : vector<2x8x8xf32>, vector<2x8x8xf32>, vector<2x8x8xf32>, vector<2x8x8xf32> -> vector<8x8x8xf32>
    %155 = vector.extract_strided_slice %147 {offsets = [0, 0, 0], sizes = [2, 8, 8], strides = [1, 1, 1]} : vector<2x8x32xf32> to vector<2x8x8xf32>
    %156 = vector.extract_strided_slice %147 {offsets = [0, 0, 8], sizes = [2, 8, 8], strides = [1, 1, 1]} : vector<2x8x32xf32> to vector<2x8x8xf32>
    %157 = vector.extract_strided_slice %147 {offsets = [0, 0, 16], sizes = [2, 8, 8], strides = [1, 1, 1]} : vector<2x8x32xf32> to vector<2x8x8xf32>
    %158 = vector.extract_strided_slice %147 {offsets = [0, 0, 24], sizes = [2, 8, 8], strides = [1, 1, 1]} : vector<2x8x32xf32> to vector<2x8x8xf32>
    %159 = tpu.concatenate %155, %156, %157, %158 in 0 : vector<2x8x8xf32>, vector<2x8x8xf32>, vector<2x8x8xf32>, vector<2x8x8xf32> -> vector<8x8x8xf32>
    %160 = vector.extract_strided_slice %149 {offsets = [0, 0, 0], sizes = [2, 8, 8], strides = [1, 1, 1]} : vector<2x8x32xf32> to vector<2x8x8xf32>
    %161 = vector.extract_strided_slice %149 {offsets = [0, 0, 8], sizes = [2, 8, 8], strides = [1, 1, 1]} : vector<2x8x32xf32> to vector<2x8x8xf32>
    %162 = vector.extract_strided_slice %149 {offsets = [0, 0, 16], sizes = [2, 8, 8], strides = [1, 1, 1]} : vector<2x8x32xf32> to vector<2x8x8xf32>
    %163 = vector.extract_strided_slice %149 {offsets = [0, 0, 24], sizes = [2, 8, 8], strides = [1, 1, 1]} : vector<2x8x32xf32> to vector<2x8x8xf32>
    %164 = tpu.concatenate %160, %161, %162, %163 in 0 : vector<2x8x8xf32>, vector<2x8x8xf32>, vector<2x8x8xf32>, vector<2x8x8xf32> -> vector<8x8x8xf32>
    "tpu.trace_start"() <{level = 10 : i32, message = "bqd,bkd->bqk"}> : () -> ()
    %cst_82 = arith.constant dense<0.000000e+00> : vector<8x8x8xf32>
    %165 = tpu.matmul %154, %159, %cst_82 {dimension_numbers = #tpu.dot_dimension_numbers<[2], [2], [1], [1], [0, 0, 0, 1, 1, 1], [0], [0]>} : vector<8x8x8xf32>, vector<8x8x8xf32>, vector<8x8x8xf32> -> vector<8x8x8xf32>
    "tpu.trace_stop"() : () -> ()
    %cst_83 = arith.constant dense<0xFF800000> : vector<8x8xf32>
    %166 = vector.multi_reduction <maximumf>, %165, %cst_83 [2] : vector<8x8x8xf32> to vector<8x8xf32>
    %167 = vector.shape_cast %166 : vector<8x8xf32> to vector<8x8x1xf32>
    %168 = vector.broadcast %167 : vector<8x8x1xf32> to vector<8x8x8xf32>
    %169 = arith.subf %165, %168 : vector<8x8x8xf32>
    %170 = math.exp %169 : vector<8x8x8xf32>
    %cst_84 = arith.constant dense<0.000000e+00> : vector<8x8xf32>
    %171 = vector.multi_reduction <add>, %170, %cst_84 [2] : vector<8x8x8xf32> to vector<8x8xf32>
    %172 = vector.shape_cast %171 : vector<8x8xf32> to vector<8x8x1xf32>
    %173 = tpu.reciprocal %172 {approx = true} : vector<8x8x1xf32> -> vector<8x8x1xf32>
    %174 = vector.broadcast %173 : vector<8x8x1xf32> to vector<8x8x8xf32>
    %175 = arith.mulf %170, %174 : vector<8x8x8xf32>
    "tpu.trace_start"() <{level = 10 : i32, message = "bqk,bkd->bqd"}> : () -> ()
    %cst_85 = arith.constant dense<0.000000e+00> : vector<8x8x8xf32>
    %176 = tpu.matmul %175, %164, %cst_85 {dimension_numbers = #tpu.dot_dimension_numbers<[2], [1], [1], [2], [0, 0, 0, 1, 1, 2], [0], [0]>} : vector<8x8x8xf32>, vector<8x8x8xf32>, vector<8x8x8xf32> -> vector<8x8x8xf32>
    "tpu.trace_stop"() : () -> ()
    %177 = vector.extract_strided_slice %176 {offsets = [0, 0, 0], sizes = [2, 8, 8], strides = [1, 1, 1]} : vector<8x8x8xf32> to vector<2x8x8xf32>
    %178 = vector.extract_strided_slice %176 {offsets = [2, 0, 0], sizes = [2, 8, 8], strides = [1, 1, 1]} : vector<8x8x8xf32> to vector<2x8x8xf32>
    %179 = vector.extract_strided_slice %176 {offsets = [4, 0, 0], sizes = [2, 8, 8], strides = [1, 1, 1]} : vector<8x8x8xf32> to vector<2x8x8xf32>
    %180 = vector.extract_strided_slice %176 {offsets = [6, 0, 0], sizes = [2, 8, 8], strides = [1, 1, 1]} : vector<8x8x8xf32> to vector<2x8x8xf32>
    %181 = tpu.concatenate %177, %178, %179, %180 in 2 : vector<2x8x8xf32>, vector<2x8x8xf32>, vector<2x8x8xf32>, vector<2x8x8xf32> -> vector<2x8x32xf32>
    %182 = vector.shape_cast %181 : vector<2x8x32xf32> to vector<16x32xf32>
    %c0_86 = arith.constant 0 : index
    %c1_87 = arith.constant 1 : index
    %c0_88 = arith.constant 0 : index
    %c0_89 = arith.constant 0 : index
    %183 = vector.load %arg5[%c0_86, %c1_87, %c0_88, %c0_89] : memref<1x2x32x32xf32, #tpu.memory_space<vmem>>, vector<1x1x32x32xf32>
    %184 = vector.shape_cast %183 : vector<1x1x32x32xf32> to vector<32x32xf32>
    %cst_90 = arith.constant dense<0.000000e+00> : vector<16x32xf32>
    %185 = tpu.matmul %182, %184, %cst_90 {dimension_numbers = #tpu.dot_dimension_numbers<[1], [0], [0], [1], [0, 0, 1, 1], [], []>} : vector<16x32xf32>, vector<32x32xf32>, vector<16x32xf32> -> vector<16x32xf32>
    %c0_91 = arith.constant 0 : index
    %c1_92 = arith.constant 1 : index
    %c0_93 = arith.constant 0 : index
    %c0_94 = arith.constant 0 : index
    %186 = vector.load %arg6[%c0_91, %c1_92, %c0_93, %c0_94] : memref<1x2x1x32xf32, #tpu.memory_space<vmem>>, vector<1x1x1x32xf32>
    %187 = vector.shape_cast %186 : vector<1x1x1x32xf32> to vector<1x32xf32>
    %188 = vector.broadcast %187 : vector<1x32xf32> to vector<16x32xf32>
    %189 = arith.addf %185, %188 : vector<16x32xf32>
    %190 = arith.addf %136, %189 : vector<16x32xf32>
    %c0_95 = arith.constant 0 : index
    %c1_96 = arith.constant 1 : index
    %c0_97 = arith.constant 0 : index
    %c0_98 = arith.constant 0 : index
    %191 = vector.load %arg11[%c0_95, %c1_96, %c0_97, %c0_98] : memref<1x2x1x32xf32, #tpu.memory_space<vmem>>, vector<1x1x1x32xf32>
    %192 = vector.shape_cast %191 : vector<1x1x1x32xf32> to vector<1x32xf32>
    %c0_99 = arith.constant 0 : index
    %c1_100 = arith.constant 1 : index
    %c0_101 = arith.constant 0 : index
    %c0_102 = arith.constant 0 : index
    %193 = vector.load %arg12[%c0_99, %c1_100, %c0_101, %c0_102] : memref<1x2x1x32xf32, #tpu.memory_space<vmem>>, vector<1x1x1x32xf32>
    %194 = vector.shape_cast %193 : vector<1x1x1x32xf32> to vector<1x32xf32>
    %cst_103 = arith.constant dense<0.000000e+00> : vector<16xf32>
    %195 = vector.multi_reduction <add>, %190, %cst_103 [1] : vector<16x32xf32> to vector<16xf32>
    %196 = vector.shape_cast %195 : vector<16xf32> to vector<16x1xf32>
    %cst_104 = arith.constant 3.200000e+01 : f32
    %197 = vector.broadcast %cst_104 : f32 to vector<16x1xf32>
    %198 = arith.divf %196, %197 : vector<16x1xf32>
    %199 = vector.broadcast %198 : vector<16x1xf32> to vector<16x32xf32>
    %200 = arith.subf %190, %199 : vector<16x32xf32>
    %201 = arith.mulf %200, %200 : vector<16x32xf32>
    %cst_105 = arith.constant dense<0.000000e+00> : vector<16xf32>
    %202 = vector.multi_reduction <add>, %201, %cst_105 [1] : vector<16x32xf32> to vector<16xf32>
    %203 = vector.shape_cast %202 : vector<16xf32> to vector<16x1xf32>
    %cst_106 = arith.constant 3.200000e+01 : f32
    %204 = vector.broadcast %cst_106 : f32 to vector<16x1xf32>
    %205 = arith.divf %203, %204 : vector<16x1xf32>
    %206 = vector.broadcast %198 : vector<16x1xf32> to vector<16x32xf32>
    %207 = arith.subf %190, %206 : vector<16x32xf32>
    %cst_107 = arith.constant 9.99999974E-6 : f32
    %208 = vector.broadcast %cst_107 : f32 to vector<16x1xf32>
    %209 = arith.addf %205, %208 : vector<16x1xf32>
    %210 = math.rsqrt %209 : vector<16x1xf32>
    %211 = vector.broadcast %210 : vector<16x1xf32> to vector<16x32xf32>
    %212 = arith.mulf %207, %211 : vector<16x32xf32>
    %213 = vector.broadcast %192 : vector<1x32xf32> to vector<16x32xf32>
    %214 = arith.mulf %212, %213 : vector<16x32xf32>
    %215 = vector.broadcast %194 : vector<1x32xf32> to vector<16x32xf32>
    %216 = arith.addf %214, %215 : vector<16x32xf32>
    %c0_108 = arith.constant 0 : index
    %c1_109 = arith.constant 1 : index
    %c0_110 = arith.constant 0 : index
    %c0_111 = arith.constant 0 : index
    %217 = vector.load %arg7[%c0_108, %c1_109, %c0_110, %c0_111] : memref<1x2x32x64xf32, #tpu.memory_space<vmem>>, vector<1x1x32x64xf32>
    %218 = vector.shape_cast %217 : vector<1x1x32x64xf32> to vector<32x64xf32>
    %cst_112 = arith.constant dense<0.000000e+00> : vector<16x64xf32>
    %219 = tpu.matmul %216, %218, %cst_112 {dimension_numbers = #tpu.dot_dimension_numbers<[1], [0], [0], [1], [0, 0, 1, 1], [], []>} : vector<16x32xf32>, vector<32x64xf32>, vector<16x64xf32> -> vector<16x64xf32>
    %c0_113 = arith.constant 0 : index
    %c1_114 = arith.constant 1 : index
    %c0_115 = arith.constant 0 : index
    %c0_116 = arith.constant 0 : index
    %220 = vector.load %arg8[%c0_113, %c1_114, %c0_115, %c0_116] : memref<1x2x1x64xf32, #tpu.memory_space<vmem>>, vector<1x1x1x64xf32>
    %221 = vector.shape_cast %220 : vector<1x1x1x64xf32> to vector<1x64xf32>
    %222 = vector.broadcast %221 : vector<1x64xf32> to vector<16x64xf32>
    %223 = arith.addf %219, %222 : vector<16x64xf32>
    %cst_117 = arith.constant 5.000000e-01 : f32
    %224 = vector.broadcast %cst_117 : f32 to vector<16x64xf32>
    %225 = arith.mulf %224, %223 : vector<16x64xf32>
    %cst_118 = arith.constant 0.707106769 : f32
    %226 = vector.broadcast %cst_118 : f32 to vector<16x64xf32>
    %227 = arith.mulf %223, %226 : vector<16x64xf32>
    %228 = math.erf %227 : vector<16x64xf32>
    %cst_119 = arith.constant 1.000000e+00 : f32
    %229 = vector.broadcast %cst_119 : f32 to vector<16x64xf32>
    %230 = arith.addf %229, %228 : vector<16x64xf32>
    %231 = arith.mulf %225, %230 : vector<16x64xf32>
    %c0_120 = arith.constant 0 : index
    %c1_121 = arith.constant 1 : index
    %c0_122 = arith.constant 0 : index
    %c0_123 = arith.constant 0 : index
    %232 = vector.load %arg9[%c0_120, %c1_121, %c0_122, %c0_123] : memref<1x2x64x32xf32, #tpu.memory_space<vmem>>, vector<1x1x64x32xf32>
    %233 = vector.shape_cast %232 : vector<1x1x64x32xf32> to vector<64x32xf32>
    %cst_124 = arith.constant dense<0.000000e+00> : vector<16x32xf32>
    %234 = tpu.matmul %231, %233, %cst_124 {dimension_numbers = #tpu.dot_dimension_numbers<[1], [0], [0], [1], [0, 0, 1, 1], [], []>} : vector<16x64xf32>, vector<64x32xf32>, vector<16x32xf32> -> vector<16x32xf32>
    %c0_125 = arith.constant 0 : index
    %c1_126 = arith.constant 1 : index
    %c0_127 = arith.constant 0 : index
    %c0_128 = arith.constant 0 : index
    %235 = vector.load %arg10[%c0_125, %c1_126, %c0_127, %c0_128] : memref<1x2x1x32xf32, #tpu.memory_space<vmem>>, vector<1x1x1x32xf32>
    %236 = vector.shape_cast %235 : vector<1x1x1x32xf32> to vector<1x32xf32>
    %237 = vector.broadcast %236 : vector<1x32xf32> to vector<16x32xf32>
    %238 = arith.addf %234, %237 : vector<16x32xf32>
    %239 = arith.addf %216, %238 : vector<16x32xf32>
    %c0_129 = arith.constant 0 : index
    %c1_130 = arith.constant 1 : index
    %c0_131 = arith.constant 0 : index
    %c0_132 = arith.constant 0 : index
    %240 = vector.load %arg13[%c0_129, %c1_130, %c0_131, %c0_132] : memref<1x2x1x32xf32, #tpu.memory_space<vmem>>, vector<1x1x1x32xf32>
    %241 = vector.shape_cast %240 : vector<1x1x1x32xf32> to vector<1x32xf32>
    %c0_133 = arith.constant 0 : index
    %c1_134 = arith.constant 1 : index
    %c0_135 = arith.constant 0 : index
    %c0_136 = arith.constant 0 : index
    %242 = vector.load %arg14[%c0_133, %c1_134, %c0_135, %c0_136] : memref<1x2x1x32xf32, #tpu.memory_space<vmem>>, vector<1x1x1x32xf32>
    %243 = vector.shape_cast %242 : vector<1x1x1x32xf32> to vector<1x32xf32>
    %cst_137 = arith.constant dense<0.000000e+00> : vector<16xf32>
    %244 = vector.multi_reduction <add>, %239, %cst_137 [1] : vector<16x32xf32> to vector<16xf32>
    %245 = vector.shape_cast %244 : vector<16xf32> to vector<16x1xf32>
    %cst_138 = arith.constant 3.200000e+01 : f32
    %246 = vector.broadcast %cst_138 : f32 to vector<16x1xf32>
    %247 = arith.divf %245, %246 : vector<16x1xf32>
    %248 = vector.broadcast %247 : vector<16x1xf32> to vector<16x32xf32>
    %249 = arith.subf %239, %248 : vector<16x32xf32>
    %250 = arith.mulf %249, %249 : vector<16x32xf32>
    %cst_139 = arith.constant dense<0.000000e+00> : vector<16xf32>
    %251 = vector.multi_reduction <add>, %250, %cst_139 [1] : vector<16x32xf32> to vector<16xf32>
    %252 = vector.shape_cast %251 : vector<16xf32> to vector<16x1xf32>
    %cst_140 = arith.constant 3.200000e+01 : f32
    %253 = vector.broadcast %cst_140 : f32 to vector<16x1xf32>
    %254 = arith.divf %252, %253 : vector<16x1xf32>
    %255 = vector.broadcast %247 : vector<16x1xf32> to vector<16x32xf32>
    %256 = arith.subf %239, %255 : vector<16x32xf32>
    %cst_141 = arith.constant 9.99999974E-6 : f32
    %257 = vector.broadcast %cst_141 : f32 to vector<16x1xf32>
    %258 = arith.addf %254, %257 : vector<16x1xf32>
    %259 = math.rsqrt %258 : vector<16x1xf32>
    %260 = vector.broadcast %259 : vector<16x1xf32> to vector<16x32xf32>
    %261 = arith.mulf %256, %260 : vector<16x32xf32>
    %262 = vector.broadcast %241 : vector<1x32xf32> to vector<16x32xf32>
    %263 = arith.mulf %261, %262 : vector<16x32xf32>
    %264 = vector.broadcast %243 : vector<1x32xf32> to vector<16x32xf32>
    %265 = arith.addf %263, %264 : vector<16x32xf32>
    %266 = vector.shape_cast %265 : vector<16x32xf32> to vector<2x8x32xf32>
    %267 = vector.extract_strided_slice %266 {offsets = [0, 0, 0], sizes = [2, 1, 32], strides = [1, 1, 1]} : vector<2x8x32xf32> to vector<2x1x32xf32>
    %268 = vector.shape_cast %267 : vector<2x1x32xf32> to vector<2x32xf32>
    %c0_142 = arith.constant 0 : index
    %c0_143 = arith.constant 0 : index
    %c0_144 = arith.constant 0 : index
    %269 = vector.load %arg15[%c0_142, %c0_143, %c0_144] : memref<1x1x32xf32, #tpu.memory_space<vmem>>, vector<1x1x32xf32>
    %270 = vector.shape_cast %269 : vector<1x1x32xf32> to vector<1x32xf32>
    %c0_145 = arith.constant 0 : index
    %c0_146 = arith.constant 0 : index
    %c0_147 = arith.constant 0 : index
    %271 = vector.load %arg16[%c0_145, %c0_146, %c0_147] : memref<1x1x32xf32, #tpu.memory_space<vmem>>, vector<1x1x32xf32>
    %272 = vector.shape_cast %271 : vector<1x1x32xf32> to vector<1x32xf32>
    %cst_148 = arith.constant dense<0.000000e+00> : vector<2xf32>
    %273 = vector.multi_reduction <add>, %268, %cst_148 [1] : vector<2x32xf32> to vector<2xf32>
    %274 = vector.shape_cast %273 : vector<2xf32> to vector<2x1xf32>
    %cst_149 = arith.constant 3.200000e+01 : f32
    %275 = vector.broadcast %cst_149 : f32 to vector<2x1xf32>
    %276 = arith.divf %274, %275 : vector<2x1xf32>
    %277 = vector.broadcast %276 : vector<2x1xf32> to vector<2x32xf32>
    %278 = arith.subf %268, %277 : vector<2x32xf32>
    %279 = arith.mulf %278, %278 : vector<2x32xf32>
    %cst_150 = arith.constant dense<0.000000e+00> : vector<2xf32>
    %280 = vector.multi_reduction <add>, %279, %cst_150 [1] : vector<2x32xf32> to vector<2xf32>
    %281 = vector.shape_cast %280 : vector<2xf32> to vector<2x1xf32>
    %cst_151 = arith.constant 3.200000e+01 : f32
    %282 = vector.broadcast %cst_151 : f32 to vector<2x1xf32>
    %283 = arith.divf %281, %282 : vector<2x1xf32>
    %284 = vector.broadcast %276 : vector<2x1xf32> to vector<2x32xf32>
    %285 = arith.subf %268, %284 : vector<2x32xf32>
    %cst_152 = arith.constant 9.99999974E-6 : f32
    %286 = vector.broadcast %cst_152 : f32 to vector<2x1xf32>
    %287 = arith.addf %283, %286 : vector<2x1xf32>
    %288 = math.rsqrt %287 : vector<2x1xf32>
    %289 = vector.broadcast %288 : vector<2x1xf32> to vector<2x32xf32>
    %290 = arith.mulf %285, %289 : vector<2x32xf32>
    %291 = vector.broadcast %270 : vector<1x32xf32> to vector<2x32xf32>
    %292 = arith.mulf %290, %291 : vector<2x32xf32>
    %293 = vector.broadcast %272 : vector<1x32xf32> to vector<2x32xf32>
    %294 = arith.addf %292, %293 : vector<2x32xf32>
    %c0_153 = arith.constant 0 : index
    %c0_154 = arith.constant 0 : index
    %c0_155 = arith.constant 0 : index
    %295 = vector.load %arg17[%c0_153, %c0_154, %c0_155] : memref<1x32x64xf32, #tpu.memory_space<vmem>>, vector<1x32x64xf32>
    %296 = vector.shape_cast %295 : vector<1x32x64xf32> to vector<32x64xf32>
    %cst_156 = arith.constant dense<0.000000e+00> : vector<2x64xf32>
    %297 = tpu.matmul %294, %296, %cst_156 {dimension_numbers = #tpu.dot_dimension_numbers<[1], [0], [0], [1], [0, 0, 1, 1], [], []>} : vector<2x32xf32>, vector<32x64xf32>, vector<2x64xf32> -> vector<2x64xf32>
    %c0_157 = arith.constant 0 : index
    %c0_158 = arith.constant 0 : index
    %c0_159 = arith.constant 0 : index
    %298 = vector.load %arg18[%c0_157, %c0_158, %c0_159] : memref<1x1x64xf32, #tpu.memory_space<vmem>>, vector<1x1x64xf32>
    %299 = vector.shape_cast %298 : vector<1x1x64xf32> to vector<1x64xf32>
    %300 = vector.broadcast %299 : vector<1x64xf32> to vector<2x64xf32>
    %301 = arith.addf %297, %300 : vector<2x64xf32>
    %cst_160 = arith.constant 5.000000e-01 : f32
    %302 = vector.broadcast %cst_160 : f32 to vector<2x64xf32>
    %303 = arith.mulf %302, %301 : vector<2x64xf32>
    %cst_161 = arith.constant 0.707106769 : f32
    %304 = vector.broadcast %cst_161 : f32 to vector<2x64xf32>
    %305 = arith.mulf %301, %304 : vector<2x64xf32>
    %306 = math.erf %305 : vector<2x64xf32>
    %cst_162 = arith.constant 1.000000e+00 : f32
    %307 = vector.broadcast %cst_162 : f32 to vector<2x64xf32>
    %308 = arith.addf %307, %306 : vector<2x64xf32>
    %309 = arith.mulf %303, %308 : vector<2x64xf32>
    %c0_163 = arith.constant 0 : index
    %c0_164 = arith.constant 0 : index
    %c0_165 = arith.constant 0 : index
    %310 = vector.load %arg19[%c0_163, %c0_164, %c0_165] : memref<1x64x128xf32, #tpu.memory_space<vmem>>, vector<1x64x128xf32>
    %311 = vector.shape_cast %310 : vector<1x64x128xf32> to vector<64x128xf32>
    %cst_166 = arith.constant dense<0.000000e+00> : vector<2x128xf32>
    %312 = tpu.matmul %309, %311, %cst_166 {dimension_numbers = #tpu.dot_dimension_numbers<[1], [0], [0], [1], [0, 0, 1, 1], [], []>} : vector<2x64xf32>, vector<64x128xf32>, vector<2x128xf32> -> vector<2x128xf32>
    %c0_167 = arith.constant 0 : index
    %c0_168 = arith.constant 0 : index
    %c0_169 = arith.constant 0 : index
    %313 = vector.load %arg20[%c0_167, %c0_168, %c0_169] : memref<1x1x128xf32, #tpu.memory_space<vmem>>, vector<1x1x128xf32>
    %314 = vector.shape_cast %313 : vector<1x1x128xf32> to vector<1x128xf32>
    %315 = vector.broadcast %314 : vector<1x128xf32> to vector<2x128xf32>
    %316 = arith.addf %312, %315 : vector<2x128xf32>
    %c0_170 = arith.constant 0 : index
    %c0_171 = arith.constant 0 : index
    %c0_172 = arith.constant 0 : index
    %317 = vector.load %arg21[%c0_170, %c0_171, %c0_172] : memref<1x2x128xf32, #tpu.memory_space<vmem>>, vector<1x2x128xf32>
    %318 = vector.shape_cast %317 : vector<1x2x128xf32> to vector<2x128xf32>
    %319 = vector.shape_cast %316 : vector<2x128xf32> to vector<1x2x128xf32>
    tpu.vector_store %arg21[%c0_170, %c0_171, %c0_172], %319 {strides = array<i32>} : memref<1x2x128xf32, #tpu.memory_space<vmem>>, vector<1x2x128xf32>,
    return
  }
  func.func @transform_0(%arg0: i32) -> (i32, i32, i32, i32) {
    %c0_i32 = arith.constant 0 : i32
    %c0_i32_0 = arith.constant 0 : i32
    %c0_i32_1 = arith.constant 0 : i32
    %c0_i32_2 = arith.constant 0 : i32
    return %arg0, %c0_i32, %c0_i32_0, %c0_i32_1 : i32, i32, i32, i32
  }
  func.func @transform_1(%arg0: i32) -> (i32, i32, i32) {
    %c0_i32 = arith.constant 0 : i32
    %c0_i32_0 = arith.constant 0 : i32
    %c0_i32_1 = arith.constant 0 : i32
    return %arg0, %c0_i32, %c0_i32_0 : i32, i32, i32
  }
  func.func @transform_2(%arg0: i32) -> (i32, i32, i32, i32) {
    %c0_i32 = arith.constant 0 : i32
    %c0_i32_0 = arith.constant 0 : i32
    %c0_i32_1 = arith.constant 0 : i32
    %c0_i32_2 = arith.constant 0 : i32
    return %arg0, %c0_i32, %c0_i32_0, %c0_i32_1 : i32, i32, i32, i32
  }
  func.func @transform_3(%arg0: i32) -> (i32, i32, i32, i32) {
    %c0_i32 = arith.constant 0 : i32
    %c0_i32_0 = arith.constant 0 : i32
    %c0_i32_1 = arith.constant 0 : i32
    %c0_i32_2 = arith.constant 0 : i32
    return %arg0, %c0_i32, %c0_i32_0, %c0_i32_1 : i32, i32, i32, i32
  }
  func.func @transform_4(%arg0: i32) -> (i32, i32, i32, i32) {
    %c0_i32 = arith.constant 0 : i32
    %c0_i32_0 = arith.constant 0 : i32
    %c0_i32_1 = arith.constant 0 : i32
    %c0_i32_2 = arith.constant 0 : i32
    return %arg0, %c0_i32, %c0_i32_0, %c0_i32_1 : i32, i32, i32, i32
  }
  func.func @transform_5(%arg0: i32) -> (i32, i32, i32, i32) {
    %c0_i32 = arith.constant 0 : i32
    %c0_i32_0 = arith.constant 0 : i32
    %c0_i32_1 = arith.constant 0 : i32
    %c0_i32_2 = arith.constant 0 : i32
    return %arg0, %c0_i32, %c0_i32_0, %c0_i32_1 : i32, i32, i32, i32
  }
  func.func @transform_6(%arg0: i32) -> (i32, i32, i32, i32) {
    %c0_i32 = arith.constant 0 : i32
    %c0_i32_0 = arith.constant 0 : i32
    %c0_i32_1 = arith.constant 0 : i32
    %c0_i32_2 = arith.constant 0 : i32
    return %arg0, %c0_i32, %c0_i32_0, %c0_i32_1 : i32, i32, i32, i32
  }
  func.func @transform_7(%arg0: i32) -> (i32, i32, i32, i32) {
    %c0_i32 = arith.constant 0 : i32
    %c0_i32_0 = arith.constant 0 : i32
    %c0_i32_1 = arith.constant 0 : i32
    %c0_i32_2 = arith.constant 0 : i32
    return %arg0, %c0_i32, %c0_i32_0, %c0_i32_1 : i32, i32, i32, i32
  }
  func.func @transform_8(%arg0: i32) -> (i32, i32, i32, i32) {
    %c0_i32 = arith.constant 0 : i32
    %c0_i32_0 = arith.constant 0 : i32
    %c0_i32_1 = arith.constant 0 : i32
    %c0_i32_2 = arith.constant 0 : i32
    return %arg0, %c0_i32, %c0_i32_0, %c0_i32_1 : i32, i32, i32, i32
  }
  func.func @transform_9(%arg0: i32) -> (i32, i32, i32, i32) {
    %c0_i32 = arith.constant 0 : i32
    %c0_i32_0 = arith.constant 0 : i32
    %c0_i32_1 = arith.constant 0 : i32
    %c0_i32_2 = arith.constant 0 : i32
    return %arg0, %c0_i32, %c0_i32_0, %c0_i32_1 : i32, i32, i32, i32
  }
  func.func @transform_10(%arg0: i32) -> (i32, i32, i32, i32) {
    %c0_i32 = arith.constant 0 : i32
    %c0_i32_0 = arith.constant 0 : i32
    %c0_i32_1 = arith.constant 0 : i32
    %c0_i32_2 = arith.constant 0 : i32
    return %arg0, %c0_i32, %c0_i32_0, %c0_i32_1 : i32, i32, i32, i32
  }
  func.func @transform_11(%arg0: i32) -> (i32, i32, i32, i32) {
    %c0_i32 = arith.constant 0 : i32
    %c0_i32_0 = arith.constant 0 : i32
    %c0_i32_1 = arith.constant 0 : i32
    %c0_i32_2 = arith.constant 0 : i32
    return %arg0, %c0_i32, %c0_i32_0, %c0_i32_1 : i32, i32, i32, i32
  }
  func.func @transform_12(%arg0: i32) -> (i32, i32, i32, i32) {
    %c0_i32 = arith.constant 0 : i32
    %c0_i32_0 = arith.constant 0 : i32
    %c0_i32_1 = arith.constant 0 : i32
    %c0_i32_2 = arith.constant 0 : i32
    return %arg0, %c0_i32, %c0_i32_0, %c0_i32_1 : i32, i32, i32, i32
  }
  func.func @transform_13(%arg0: i32) -> (i32, i32, i32, i32) {
    %c0_i32 = arith.constant 0 : i32
    %c0_i32_0 = arith.constant 0 : i32
    %c0_i32_1 = arith.constant 0 : i32
    %c0_i32_2 = arith.constant 0 : i32
    return %arg0, %c0_i32, %c0_i32_0, %c0_i32_1 : i32, i32, i32, i32
  }
  func.func @transform_14(%arg0: i32) -> (i32, i32, i32) {
    %c0_i32 = arith.constant 0 : i32
    %c0_i32_0 = arith.constant 0 : i32
    %c0_i32_1 = arith.constant 0 : i32
    return %arg0, %c0_i32, %c0_i32_0 : i32, i32, i32
  }
  func.func @transform_15(%arg0: i32) -> (i32, i32, i32) {
    %c0_i32 = arith.constant 0 : i32
    %c0_i32_0 = arith.constant 0 : i32
    %c0_i32_1 = arith.constant 0 : i32
    return %arg0, %c0_i32, %c0_i32_0 : i32, i32, i32
  }
  func.func @transform_16(%arg0: i32) -> (i32, i32, i32) {
    %c0_i32 = arith.constant 0 : i32
    %c0_i32_0 = arith.constant 0 : i32
    %c0_i32_1 = arith.constant 0 : i32
    return %arg0, %c0_i32, %c0_i32_0 : i32, i32, i32
  }
  func.func @transform_17(%arg0: i32) -> (i32, i32, i32) {
    %c0_i32 = arith.constant 0 : i32
    %c0_i32_0 = arith.constant 0 : i32
    %c0_i32_1 = arith.constant 0 : i32
    return %arg0, %c0_i32, %c0_i32_0 : i32, i32, i32
  }
  func.func @transform_18(%arg0: i32) -> (i32, i32, i32) {
    %c0_i32 = arith.constant 0 : i32
    %c0_i32_0 = arith.constant 0 : i32
    %c0_i32_1 = arith.constant 0 : i32
    return %arg0, %c0_i32, %c0_i32_0 : i32, i32, i32
  }
  func.func @transform_19(%arg0: i32) -> (i32, i32, i32) {
    %c0_i32 = arith.constant 0 : i32
    %c0_i32_0 = arith.constant 0 : i32
    %c0_i32_1 = arith.constant 0 : i32
    return %arg0, %c0_i32, %c0_i32_0 : i32, i32, i32
  }
  func.func @transform_20(%arg0: i32) -> (i32, i32, i32) {
    %c0_i32 = arith.constant 0 : i32
    %c0_i32_0 = arith.constant 0 : i32
    %c0_i32_1 = arith.constant 0 : i32
    return %arg0, %c0_i32, %c0_i32_0 : i32, i32, i32
  }
}

</mosaic_0001>

<bundles_post_ra>
// kernel: tpu_custom_call.1
= control target key start
LH: loop header
LB: loop body
LE: loop exit
PB: predicated region body
PF: predicated region fallthrough
CT: control target
= control target key end

     0   :  { %s7319_s0 = inlined_call_operand.hbm [shape: f32[2,2,8,32], index: 0, kind: input, shape index: {}]   ;;  %s7320_s1 = inlined_call_operand.hbm [shape: f32[2,8,32], index: 1, kind: input, shape index: {}]   ;;  %s7321_s2 = inlined_call_operand.vmem [shape: f32[2,2,32,96], index: 2, kind: input, shape index: {}]   ;;  %s7322_s3 = inlined_call_operand.vmem [shape: f32[2,2,1,96], index: 3, kind: input, shape index: {}]   ;;  %s7323_s4 = inlined_call_operand.vmem [shape: f32[2,2,32,32], index: 4, kind: input, shape index: {}]   ;;  %s7324_s5 = inlined_call_operand.vmem [shape: f32[2,2,1,32], index: 5, kind: input, shape index: {}]   ;;  %s7325_s6 = inlined_call_operand.vmem [shape: f32[2,2,32,64], index: 6, kind: input, shape index: {}]   ;;  %s7326_s7 = inlined_call_operand.vmem [shape: f32[2,2,1,64], index: 7, kind: input, shape index: {}]   ;;  %s7327_s8 = inlined_call_operand.vmem [shape: f32[2,2,64,32], index: 8, kind: input, shape index: {}]   ;;  %s7328_s9 = inlined_call_operand.vmem [shape: f32[2,2,1,32], index: 9, kind: input, shape index: {}]   ;;  %s7329_s10 = inlined_call_operand.vmem [shape: f32[2,2,1,32], index: 10, kind: input, shape index: {}]   ;;  %s7330_s11 = inlined_call_operand.vmem [shape: f32[2,2,1,32], index: 11, kind: input, shape index: {}]   ;;  %s7331_s12 = inlined_call_operand.vmem [shape: f32[2,2,1,32], index: 12, kind: input, shape index: {}]   ;;  %s7332_s13 = inlined_call_operand.vmem [shape: f32[2,2,1,32], index: 13, kind: input, shape index: {}]   ;;  %s7333_s14 = inlined_call_operand.vmem [shape: f32[2,1,32], index: 14, kind: input, shape index: {}]   ;;  %s7334_s15 = inlined_call_operand.vmem [shape: f32[2,1,32], index: 15, kind: input, shape index: {}]   ;;  %s7335_s16 = inlined_call_operand.hbm [shape: f32[2,32,64], index: 16, kind: input, shape index: {}]   ;;  %s7336_s17 = inlined_call_operand.vmem [shape: f32[2,1,64], index: 17, kind: input, shape index: {}]   ;;  %s7337_s18 = inlined_call_operand.hbm [shape: f32[2,64,128], index: 18, kind: input, shape index: {}]   ;;  %s7338_s19 = inlined_call_operand.vmem [shape: f32[2,1,128], index: 19, kind: input, shape index: {}]   ;;  %s7339_s20 = inlined_call_operand.hbm [shape: f32[2,2,128], index: 20, kind: output, shape index: {}]  }
   0x1   :  { %7370 = sst [smem:[#allocation21_spill]] %s7319_s0 }
   0x2   :  { %7371 = sst [smem:[#allocation22_spill]] %s7320_s1 }
   0x3   :  { %7372 = sst [smem:[#allocation23_spill]] %s7321_s2 }
   0x4   :  { %7373 = sst [smem:[#allocation24_spill]] %s7322_s3 }
   0x5   :  { %7374 = sst [smem:[#allocation25_spill]] %s7323_s4 }
   0x6   :  { %7375 = sst [smem:[#allocation26_spill]] %s7324_s5 }
   0x7   :  { %7376 = sst [smem:[#allocation27_spill]] %s7325_s6 }
   0x8   :  { %7377 = sst [smem:[#allocation28_spill]] %s7326_s7 }
   0x9   :  { %7378 = sst [smem:[#allocation29_spill]] %s7331_s12 }
   0xa   :  { %7379 = sst [smem:[#allocation30_spill]] %s7332_s13 }
   0xb   :  { %7380 = sst [smem:[#allocation31_spill]] %s7333_s14 }
   0xc   :  { %7381 = sst [smem:[#allocation32_spill]] %s7334_s15 }
   0xd   :  { %7382 = sst [smem:[#allocation33_spill]] %s7336_s17 }
   0xe   :  { %7383 = sst [smem:[#allocation34_spill]] %s7338_s19 }
   0xf   :  { %7384 = sst [smem:[#allocation35_spill]] %s7339_s20 }
  0x10   :  { %25 = vsyncpa [#allocation3], 0 }
  0x11   :  { %27 = vsyncpa [#allocation3 + $0x1], 0 }
  0x12   :  { %28 = vsyncpa [#allocation6], 0 }
  0x13   :  { %30 = vsyncpa [#allocation6 + $0x1], 0 }
  0x14   :  { %31 = vsyncpa [#allocation9], 0 }
  0x15   :  { %33 = vsyncpa [#allocation9 + $0x1], 0 }
  0x16   :  { %34 = vsyncpa [#allocation4], 0 }
  0x17   :  { %36 = vsyncpa [#allocation4 + $0x1], 0  ;;  %s6438_s1 = smov 0   ;;  %s6440_s22 = smov 0  }
  0x18   :  { %s6442_s23 = smov 0   ;;  %s6444_s24 = smov 0  }
  0x19 LB: > { %7385 = sst [smem:[#allocation15_spill]] %s6301_s1  ;;  %s6459_s2 = sadd.s32 4294967295, %s6313_s24   ;;  %s6313_s24 = sphi %s6444_s24, %s7430_s24   ;;  %s6309_s23 = sphi %s6442_s23, %s7432_s23   ;;  %s6305_s22 = sphi %s6440_s22, %s7434_s22   ;;  %s6301_s1 = sphi %s6438_s1, %s7433_s1  }
  0x1a   : > { %7386 = sst [smem:[#allocation16_spill]] %s6309_s23  ;;  %s5266_s25 = sadd.s32 4294967294, %s6313_s24  }
  0x1b   : > { %s6463_s3 = sadd.s32 1, %s6313_s24   ;;  %s49_s26 = sadd.s32 1, %s6309_s23 }
  0x1c   : > { %7387 = sst [smem:[#allocation17_spill]] %s6463_s3  ;;  %s46_s27 = ssub.s32 %s6313_s24, %s6463_s3 }
  0x1d   : > { %p56_p0 = scmp.ne.s32.totalorder %s6309_s23, %s6305_s22  ;;  %p47_p1 = scmp.eq.s32.totalorder %s46_s27, 0 }
  0x1e   : > { %p57_p2 = scmp.eq.s32.totalorder %s6313_s24, 0  ;;  %p62_p3 = scmp.ne.s32.totalorder %s6305_s22, %s6301_s1 }
  0x1f   : > { %p63_p4 = scmp.eq.s32.totalorder %s6459_s2, 0  ;;  %p580_p7 = scmp.eq.s32.totalorder %s6459_s2, 1 }
  0x20   : > { %s6475_s28 = scalar_select %p47_p1, %s6309_s23, %s49_s26  }
  0x21   : > { %p58_p5 = por %p57_p2, %p56_p0  ;;  %p6477_p6 = por %p63_p4, %p62_p3 }
  0x22   : > { %7388 = sst [smem:[#allocation18_spill]] %s6475_s28  ;;  %p586_p8 = scmp.eq.s32.totalorder %s5266_s25, 1 }
  0x23   : > { %s7389_s4 = scalar_select %p6477_p6, 1, 0 }
  0x24   : > { %p5980_p10 = scmp.lt.s32.totalorder %s6313_s24, 2  ;;  %p6484_p11 = por %p580_p7, %p56_p0 }
  0x25   : > { %p6488_p12 = por %p586_p8, %p62_p3  ;;  %s6493_s0 = sand.u32 1, %s6309_s23  }
  0x26   : > { %s7390_s29 = scalar_select %p6484_p11, 1, 0 }
  0x27   : > { %s7392_s30 = scalar_select %p6488_p12, 1, 0 }
  0x28   : > { %7391 = sst [smem:[#allocation19_spill]] %s7390_s29  ;;  %p6495_p13 = pnand %p5980_p10, %p58_p5 }
  0x29   : > { %7393 = sst [smem:[#allocation20_spill]] %s7392_s30  ;;  %s627_s26 = sand.u32 1, %s6313_s24  }
  0x2a   : > { %s5272_s25 = sshll.u32 %s6493_s0, 3  ;;  %s5273_s27 = sshll.u32 %s6313_s24, 7 }
  0x2b   : > { %s7395_s1 = sld [smem:[#allocation22_spill]]  ;;  %s631_s23 = scalar_lea.vmem [#allocation5], %s5272_s25 }
  0x2c   : > { %s638_s30 = sshll.u32 %s631_s23, 4  ;;  %s6510_s29 = scalar_lea.sflag [#allocation6], %s627_s26  ;;  %s6507_s30 = int_to_ptr.vmem [resolvable:$true] %s638_s30 }
  0x2d   : > { %p6516_p2 = pneg %p6495_p13 }
  0x31   : > { %s7396_s20 = smov %s7395_s1  ;;  %s6505_s19 = scalar_lea.hbm %s7395_s1, %s5273_s27 }
  0x32   : > { %s6119_s17 = scalar_lea.hbm %s6505_s19, 128  ;;  %s6124_s23 = scalar_lea.hbm %s7396_s20, 256 }
  0x33   : > { %p6120_p1 = scmp.ne.s32.totalorder %s6505_s19, %s6119_s17  ;;  %p6125_p5 = scmp.lt.u32.totalorder %s6505_s19, %s7396_s20 }
  0x34   : > { %p6126_p7 = scmp.lt.u32.totalorder %s6124_s23, %s6119_s17  ;;  %p6128_p10 = scmp.lt.u32.totalorder %s6119_s17, %s6505_s19 }
  0x35   : > { %p6122_p3 = pnand %p6516_p2, %p6120_p1 }
  0x36   : > { %p6127_p8 = por %p6126_p7, %p6125_p5 }
  0x37   : > { %p6123_p4 = pneg %p6122_p3 }
  0x38   : > { %p6129_p9 = por %p6128_p10, %p6127_p8 }
  0x3a   : > { %p6130_p0 = pnand %p6129_p9, %p6123_p4 }
  0x3c   : > { %6133 = shalt.err (!%p6130_p0)
}
  0x3d   : > { %s6134_s26 = scalar_lea.vmem %s6507_s30, 128  ;;  %s6315_s27 = smov [#allocation5]  }
  0x3e   : > { %p6135_p1 = scmp.ne.s32.totalorder %s6507_s30, %s6134_s26  ;;  %s6139_s1 = sshll.u32 %s6315_s27, 4  ;;  %s6140_s1 = int_to_ptr.vmem [resolvable:$false] %s6139_s1 }
  0x3f   : > { %s6141_s3 = scalar_lea.vmem %s6140_s1, 256  ;;  %p6142_p11 = scmp.lt.s32.totalorder %s6507_s30, %s6140_s1 }
  0x40   : > { %p6137_p3 = pnand %p6135_p1, %p6516_p2  ;;  %p6143_p6 = scmp.lt.s32.totalorder %s6141_s3, %s6134_s26 }
  0x42   : > { %p6138_p12 = pneg %p6137_p3  ;;  %p6144_p5 = por %p6143_p6, %p6142_p11 }
  0x44   : > { %p6145_p7 = pnand %p6144_p5, %p6138_p12 }
  0x46   : > { %6148 = shalt.err (!%p6145_p7)
}
  0x47   : > { %5969 = dma.hbm_to_vmem [thread:$0]  (!%p6495_p13), %s6505_s19, 128, %s6507_s30, %s6510_s29  }
  0x48   : > { %p797_p9 = scmp.lt.s32.totalorder %s6313_s24, 3  ;;  %s5269_s17 = sshll.u32 %s6493_s0, 4 }
  0x49   : > { %s5420_s23 = sshll.u32 %s6313_s24, 8  ;;  %p7398_p0 = scmp.ge.s32.totalorder %s6313_s24, 1 }
  0x4a   : > { %s7400_s27 = sld [smem:[#allocation21_spill]]  ;;  %s610_s3 = scalar_lea.vmem [#allocation2], %s5269_s17 }
  0x4b   : > { %p6545_p6 = pnand %p7398_p0, %p797_p9  ;;  %s617_s20 = sshll.u32 %s610_s3, 4  ;;  %s6554_s20 = int_to_ptr.vmem [resolvable:$true] %s617_s20 }
  0x4c   : > { %s5274_s19 = sshll.u32 %s6493_s0, 5  ;;  %s607_s30 = scalar_lea.sflag [#allocation3], %s6493_s0 }
  0x4d   : > { %s7399_s28 = scalar_select %p6545_p6, 1, 0 }
  0x50   : > { %s6552_s1 = scalar_lea.hbm %s7400_s27, %s5420_s23  ;;  %s6154_s23 = scalar_lea.hbm %s7400_s27, 512 }
  0x51   : > { %s6149_s14 = scalar_lea.hbm %s6552_s1, 256  ;;  %p6155_p8 = scmp.lt.u32.totalorder %s6552_s1, %s7400_s27 }
  0x52   : > { %p6150_p11 = scmp.ne.s32.totalorder %s6552_s1, %s6149_s14  ;;  %p6156_p10 = scmp.lt.u32.totalorder %s6154_s23, %s6149_s14 }
  0x53   : > { %p6158_p3 = scmp.lt.u32.totalorder %s6149_s14, %s6552_s1 }
  0x54   : > { %p6152_p12 = pnand %p6150_p11, %p6516_p2  ;;  %p6157_p1 = por %p6156_p10, %p6155_p8 }
  0x56   : > { %p6153_p4 = pneg %p6152_p12  ;;  %p6159_p5 = por %p6158_p3, %p6157_p1 }
  0x58   : > { %p6160_p7 = pnand %p6159_p5, %p6153_p4 }
  0x5a   : > { %6163 = shalt.err (!%p6160_p7)
}
  0x5b   : > { %s6164_s17 = scalar_lea.vmem %s6554_s20, 256  ;;  %s6316_s12 = smov [#allocation2]  }
  0x5c   : > { %p6165_p9 = scmp.ne.s32.totalorder %s6554_s20, %s6164_s17  ;;  %s6169_s13 = sshll.u32 %s6316_s12, 4  ;;  %s6170_s13 = int_to_ptr.vmem [resolvable:$false] %s6169_s13 }
  0x5d   : > { %s6171_s3 = scalar_lea.vmem %s6170_s13, 512  ;;  %p6172_p12 = scmp.lt.s32.totalorder %s6554_s20, %s6170_s13 }
  0x5e   : > { %p6167_p0 = pnand %p6165_p9, %p6516_p2  ;;  %p6173_p6 = scmp.lt.s32.totalorder %s6171_s3, %s6164_s17 }
  0x60   : > { %p6168_p11 = pneg %p6167_p0  ;;  %p6174_p8 = por %p6173_p6, %p6172_p12 }
  0x62   : > { %p6175_p10 = pnand %p6174_p8, %p6168_p11 }
  0x64   : > { %6178 = shalt.err (!%p6175_p10)
}
  0x65   : > { %s6317_s14 = smov 128   ;;  %s6318_s23 = smov 8  }
  0x66   : > { %5966 = dma.hbm_to_vmem [thread:$0]  (!%p6495_p13), %s6552_s1, 256, %s6554_s20, %s607_s30, %s6317_s14, %s6317_s14, %s6318_s23  }
  0x67   : > { %s5421_s25 = sshll.u32 %s6313_s24, 9  ;;  %s749_s13 = scalar_lea.vmem [#allocation7], %s5274_s19 }
  0x68   : > { %s6588_s12 = scalar_lea.hbm %s7335_s16, %s5421_s25  ;;  %s756_s3 = sshll.u32 %s749_s13, 4  ;;  %s6592_s3 = int_to_ptr.vmem [resolvable:$true] %s756_s3 }
  0x69   : > { %s6179_s27 = scalar_lea.hbm %s6588_s12, 512  ;;  %s6184_s30 = scalar_lea.hbm %s7335_s16, 1024 }
  0x6a   : > { %p6180_p6 = scmp.ne.s32.totalorder %s6588_s12, %s6179_s27  ;;  %p6185_p3 = scmp.lt.u32.totalorder %s6588_s12, %s7335_s16 }
  0x6b   : > { %p6186_p5 = scmp.lt.u32.totalorder %s6184_s30, %s6179_s27  ;;  %p6188_p9 = scmp.lt.u32.totalorder %s6179_s27, %s6588_s12 }
  0x6c   : > { %p6182_p4 = pnand %p6180_p6, %p6516_p2 }
  0x6d   : > { %p6187_p7 = por %p6186_p5, %p6185_p3 }
  0x6e   : > { %p6183_p1 = pneg %p6182_p4 }
  0x6f   : > { %p6189_p0 = por %p6188_p9, %p6187_p7 }
  0x71   : > { %p6190_p11 = pnand %p6189_p0, %p6183_p1 }
  0x73   : > { %6193 = shalt.err (!%p6190_p11)
}
  0x74   : > { %s6194_s19 = scalar_lea.vmem %s6592_s3, 512  ;;  %s6319_s17 = smov [#allocation7]  }
  0x75   : > { %p6195_p12 = scmp.ne.s32.totalorder %s6592_s3, %s6194_s19  ;;  %s6199_s13 = sshll.u32 %s6319_s17, 4  ;;  %s6200_s13 = int_to_ptr.vmem [resolvable:$false] %s6199_s13 }
  0x76   : > { %s6201_s20 = scalar_lea.vmem %s6200_s13, 1024  ;;  %p6202_p6 = scmp.lt.s32.totalorder %s6592_s3, %s6200_s13 }
  0x77   : > { %p6197_p8 = pnand %p6195_p12, %p6516_p2  ;;  %p6203_p4 = scmp.lt.s32.totalorder %s6201_s20, %s6194_s19 }
  0x79   : > { %p6198_p10 = pneg %p6197_p8  ;;  %p6204_p3 = por %p6203_p4, %p6202_p6 }
  0x7b   : > { %p6205_p5 = pnand %p6204_p3, %p6198_p10 }
  0x7d   : > { %6208 = shalt.err (!%p6205_p5)
}
  0x7e   : > { %5972 = dma.hbm_to_vmem [thread:$0]  (!%p6495_p13), %s6588_s12, 512, %s6592_s3, %s6510_s29, %s6317_s14, %s6317_s14, %s6318_s23  }
  0x7f   : > { %s5277_s27 = sshll.u32 %s6493_s0, 6  ;;  %s5422_s1 = sshll.u32 %s6313_s24, 10 }
  0x80   : > { %s6624_s26 = scalar_lea.hbm %s7337_s18, %s5422_s1  ;;  %s776_s19 = scalar_lea.vmem [#allocation8], %s5277_s27 }
  0x81   : > { %s783_s17 = sshll.u32 %s776_s19, 4  ;;  %s773_s13 = scalar_lea.sflag [#allocation9], %s6493_s0  ;;  %s6626_s17 = int_to_ptr.vmem [resolvable:$true] %s783_s17 }
  0x82   : > { %s6209_s20 = scalar_lea.hbm %s6624_s26, 1024  ;;  %s6214_s3 = scalar_lea.hbm %s7337_s18, 2048 }
  0x83   : > { %p6210_p1 = scmp.ne.s32.totalorder %s6624_s26, %s6209_s20  ;;  %p6215_p0 = scmp.lt.u32.totalorder %s6624_s26, %s7337_s18 }
  0x84   : > { %p6216_p11 = scmp.lt.u32.totalorder %s6214_s3, %s6209_s20  ;;  %p6218_p8 = scmp.lt.u32.totalorder %s6209_s20, %s6624_s26 }
  0x85   : > { %p6212_p7 = pnand %p6210_p1, %p6516_p2 }
  0x86   : > { %p6217_p12 = por %p6216_p11, %p6215_p0 }
  0x87   : > { %p6213_p9 = pneg %p6212_p7 }
  0x88   : > { %p6219_p10 = por %p6218_p8, %p6217_p12 }
  0x8a   : > { %p6220_p6 = pnand %p6219_p10, %p6213_p9 }
  0x8c   : > { %6223 = shalt.err (!%p6220_p6)
}
  0x8d   : > { %s6224_s27 = scalar_lea.vmem %s6626_s17, 1024  ;;  %s6320_s25 = smov [#allocation8]  }
  0x8e   : > { %p6225_p4 = scmp.ne.s32.totalorder %s6626_s17, %s6224_s27  ;;  %s6229_s19 = sshll.u32 %s6320_s25, 4  ;;  %s6230_s19 = int_to_ptr.vmem [resolvable:$false] %s6229_s19 }
  0x8f   : > { %s6231_s29 = scalar_lea.vmem %s6230_s19, 2048  ;;  %p6232_p1 = scmp.lt.s32.totalorder %s6626_s17, %s6230_s19 }
  0x90   : > { %p6227_p3 = pnand %p6225_p4, %p6516_p2  ;;  %p6233_p7 = scmp.lt.s32.totalorder %s6231_s29, %s6224_s27 }
  0x92   : > { %p6228_p5 = pneg %p6227_p3  ;;  %p6234_p0 = por %p6233_p7, %p6232_p1 }
  0x94   : > { %p6235_p11 = pnand %p6234_p0, %p6228_p5 }
  0x96   : > { %6238 = shalt.err (!%p6235_p11)
}
  0x97   : > { %5975 = dma.hbm_to_vmem [thread:$0]  (!%p6495_p13), %s6624_s26, 1024, %s6626_s17, %s773_s13, %s6317_s14, %s6317_s14, %s6318_s23  }
  0x98   : > { %p7401_p2 = scmp.ne.s32.totalorder %s7399_s28, 0 }
  0x99   : > { %s6658_s15 = sand.u32 (!%p7401_p2), 1, %s6305_s22   ;;  %p7402_p9 = scmp.ne.s32.totalorder (!%p7401_p2), %s7389_s4, 0 }
  0x9a   : > { %801 = sbr.rel (%p7401_p2) target bundleno = 6195 (0x1833), region = 100  ;;  %s5281_s20 = sshll.u32 (!%p7401_p2), %s6658_s15, 4 }
  0x9b   : > { %s804_s12 = scalar_lea.sflag (!%p7401_p2), [#allocation3], %s6658_s15  ;;  %s6662_s21 = scalar_lea.vmem (!%p7401_p2), [#allocation2], %s5281_s20 }
  0xa1   : > { %6284 = dma.done.wait (%p7402_p9), %s804_s12, 256  }
  0xa2   : > { %6286 = vsyncadd (%p7402_p9), %s804_s12, 4294967040  ;;  %s812_s0 = sand.u32 1, %s6459_s2   ;;  %s5282_s28 = sshll.u32 %s6658_s15, 3 }
  0xa3   : > { %s813_s14 = scalar_lea.sflag [#allocation6], %s812_s0  ;;  %s816_s23 = scalar_lea.vmem [#allocation5], %s5282_s28 }
  0xa4   : > { %6288 = dma.done.wait (%p7402_p9), %s813_s14, 640  }
  0xa5   : > { %6290 = vsyncadd (%p7402_p9), %s813_s14, 4294966656  ;;  %s5283_s26 = sshll.u32 %s6658_s15, 5  ;;  %s5284_s17 = sshll.u32 %s6658_s15, 6 }
  0xa6   : > { %s6676_s13 = scalar_lea.vmem [#allocation7], %s5283_s26  ;;  %s831_s3 = scalar_lea.sflag [#allocation9], %s6658_s15 }
  0xa7   : > { %s6679_s1 = scalar_lea.vmem [#allocation8], %s5284_s17 }
  0xa8   : > { %6292 = dma.done.wait (%p7402_p9), %s831_s3, 1024  }
  0xa9   : > { %6294 = vsyncadd (%p7402_p9), %s831_s3, 4294966272  ;;  %p970_p13 = scmp.lt.s32.totalorder %s6459_s2, 1  ;;  %s7403_s29 = sld [smem:[#allocation23_spill]]  ;;  %v1034_v5 = vld [vmem:[%s6662_s21] sm:$0xff]  ;;  %vm1050_vm0 = vcmask 261120   ;;  %v1035_v9 = vld [vmem:[%s6662_s21 + $0x8] sm:$0xff] }
  0xaa   : > { %v1036_v7 = vld [vmem:[%s816_s23] sm:$0xff]  ;;  %s7404_s28 = sld [smem:[#allocation24_spill]]  ;;  %v6321_v13 = vmov 0.0   ;;  %s7364_s21 = smov 112   ;;  %vm6324_vm1 = vmmov 0   ;;  %vm1148_vm2 = vcmask 64512  }
  0xab   : > { %s6687_s30 = scalar_select %p970_p13, %s6459_s2, 1  ;;  %v6703_v8 = vadd.f32 %v1036_v7, %v1034_v5  ;;  %v6708_v10 = vadd.f32 %v1036_v7, %v1035_v9  ;;  %5577 = vmatprep.subr.mxu1 %v6321_v13  ;;  %5579 = vmatprep.mubr.msk.f32.mxu1 %vm6324_vm1, %v6321_v13  ;;  %vm2477_vm3 = vcmask 130048   ;;  %vm2480_vm4 = vcmask 195584  }
  0xac   : > { %s7368_s23 = smov 120   ;;  %s7366_s26 = smov 104   ;;  %vm2739_vm5 = vcmask 523264   ;;  %vm4706_vm6 = vcmask 1041409   ;;  %vm4709_vm7 = vcmask 254976  }
  0xad   : > { %s6690_s27 = sshll.u32 %s6687_s30, 6  ;;  %5569 = vmatprep.mubr.msk.f32.mxu0 %vm1050_vm0, %v6703_v8  ;;  %s6713_s4 = sshll.u32 %s6687_s30, 1 }
  0xae   : > { %s7362_s17 = smov 96   ;;  %s7360_s3 = smov 64  }
  0xaf   : > { %s6696_s20 = scalar_lea.vmem %s7403_s29, %s6690_s27  ;;  %s7405_s29 = sld [smem:[#allocation25_spill]] }
  0xb0   : > { %v1039_v0 = vld [vmem:[%s6696_s20] sm:$0xff]  ;;  %v1040_v1 = vld [vmem:[%s6696_s20 + $0x8] sm:$0xff]  ;;  %v1041_v2 = vld [vmem:[%s6696_s20 + $0x10] sm:$0xff]  ;;  %s6719_s14 = scalar_lea.vmem %s7404_s28, %s6713_s4  ;;  %s7358_s0 = smov 8  }
  0xb1   : > { %v5855_v3 = vpack.c.bf16 %v1040_v1, %v1039_v0  ;;  %v1042_v4 = vld [vmem:[%s6696_s20 + $0x18] sm:$0xff]  ;;  %v5302_v11 = vld [vmem:[%s6719_s14] ss:$0 sm:$0xff]  ;;  %s7356_s28 = smov 16   ;;  %s7354_s25 = smov 24  }
  0xb2   : > { %v5859_v6 = vpack.c.bf16 %v1042_v4, %v1041_v2  ;;  %s7406_s5 = sld [smem:[#allocation26_spill]]  ;;  %s7407_s6 = sld [smem:[#allocation27_spill]] }
  0xb3   : > { %5856 = vmatprep.subr.bf16.mxu0 %v5855_v3  ;;  %s7408_s7 = sld [smem:[#allocation28_spill]] }
  0xb4   : > { %5858 = vmatpush3.bf16.msra.mxu0 %v5855_v3 }
  0xb5   : > { %5860 = vmatprep.subr.bf16.mxu0 %v5859_v6  ;;  %s6894_s12 = scalar_lea.vmem %s7405_s29, %s6690_s27  ;;  %s6941_s29 = scalar_lea.vmem %s7329_s10, %s6713_s4 }
  0xb8   : > { %5862 = vmatpush3.bf16.msra.mxu0 %v5859_v6 }
  0xb9   : > { %5572 = vmatprep.subr.mxu0 %v6321_v13 }
  0xbb   : > { %5570 = vmatmul.mubr.msk.f32.vlgmr.msra.gmra.mrb[0].mxu0 %vm1050_vm0, %v6708_v10 }
  0xbc   : > { %5574 = vmatprep.mubr.msk.f32.mxu0 %vm6324_vm1, %v6321_v13 }
 0x18e   : > { %v5571_v12 = vpop.f32.mrb[0].mxu0 }
 0x18f   : > { %v1123_v14 = vpop.f32.mrb[1].mxu0  ;;  %v6734_v16 = vadd.f32 %v5571_v12, %v5302_v11 }
 0x190   : > { %v6724_v15 = vadd.f32 %v5302_v11, %v1123_v14 }
 0x192   : > { %1138 = vrot.lane.b32.xlu1 %v6724_v15, %s7364_s21  ;;  %1134 = vrot.lane.b32.xlu0 %v6724_v15, %s7368_s23 }
 0x196   : > { %1140 = vrot.lane.b32.xlu1 %v6734_v16, %s7364_s21  ;;  %1136 = vrot.lane.b32.xlu0 %v6734_v16, %s7368_s23  ;;  %s6983_s21 = scalar_lea.vmem %s7328_s9, %s6713_s4  ;;  %s7414_s23 = smov 96  }
 0x19a   : > { %1144 = vrot.lane.b32.xlu1 %v6734_v16, %s7366_s26  ;;  %1142 = vrot.lane.b32.xlu0 %v6724_v15, %s7366_s26  ;;  %s7409_s26 = sld [smem:[#allocation29_spill]] }
 0x19e   : > { %1223 = vrot.lane.b32.xlu1 %v6734_v16, %s7362_s17  ;;  %1146 = vrot.lane.b32.xlu0 %v6724_v15, %s7362_s17 }
 0x204   : > { %v6748_v17 = vpop.permute.xlu1 %1138  ;;  %v6750_v18 = vpop.permute.xlu0 %1134 }
 0x205   : > { %1299 = vrot.lane.b32.xlu0 %v6750_v18, %s7362_s17 }
 0x208   : > { %v6754_v19 = vpop.permute.xlu1 %1140  ;;  %v6756_v20 = vpop.permute.xlu0 %1136 }
 0x209   : > { %1451 = vrot.lane.b32.xlu0 %v6748_v17, %s7362_s17  ;;  %1375 = vrot.lane.b32.xlu1 %v6756_v20, %s7362_s17 }
 0x20c   : > { %v6762_v21 = vpop.permute.xlu1 %1144  ;;  %v6764_v22 = vpop.permute.xlu0 %1142 }
 0x20d   : > { %1527 = vrot.lane.b32.xlu1 %v6754_v19, %s7362_s17  ;;  %1603 = vrot.lane.b32.xlu0 %v6764_v22, %s7362_s17 }
 0x210   : > { %v1224_v23 = vpop.permute.xlu1 %1223  ;;  %v1147_v24 = vpop.permute.xlu0 %1146 }
 0x211   : > { %5578 = vmatpush3.xpose.msk.msra.mxu1 %vm1148_vm2, %v1224_v23  ;;  %1679 = vrot.lane.b32.xlu1 %v6762_v21, %s7362_s17  ;;  %s6947_s17 = scalar_lea.vmem %s7330_s11, %s6713_s4 }
 0x212   : > { %5573 = vmatpush3.xpose.msk.msra.mxu0 %vm1148_vm2, %v1147_v24  ;;  %5587 = vmatprep.subr.mxu1 %v6321_v13 }
 0x213   : > { %5582 = vmatprep.subr.mxu0 %v6321_v13 }
 0x214   : > { %5580 = vmatmul.mubr.msk.f32.vlgmr.msra.gmra.mrb[0].mxu1 %vm1148_vm2, %v6734_v16 }
 0x215   : > { %5575 = vmatmul.mubr.msk.f32.vlgmr.msra.gmra.mrb[2].mxu0 %vm1148_vm2, %v6724_v15  ;;  %5589 = vmatprep.mubr.msk.f32.mxu1 %vm6324_vm1, %v6321_v13 }
 0x216   : > { %5584 = vmatprep.mubr.msk.f32.mxu0 %vm6324_vm1, %v6321_v13 }
 0x277   : > { %v1300_v25 = vpop.permute.xlu0 %1299 }
 0x278   : > { %5583 = vmatpush3.xpose.msk.msra.mxu0 %vm1148_vm2, %v1300_v25 }
 0x279   : > { %5592 = vmatprep.subr.mxu0 %v6321_v13 }
 0x27b   : > { %v1376_v26 = vpop.permute.xlu1 %1375  ;;  %5585 = vmatmul.mubr.msk.f32.vlgmr.msra.gmra.mrb[4].mxu0 %vm1148_vm2, %v6750_v18  ;;  %v1452_v27 = vpop.permute.xlu0 %1451 }
 0x27c   : > { %5588 = vmatpush3.xpose.msk.msra.mxu1 %vm1148_vm2, %v1376_v26  ;;  %5593 = vmatpush3.xpose.msk.msra.mxu0 %vm1148_vm2, %v1452_v27 }
 0x27d   : > { %5594 = vmatprep.mubr.msk.f32.mxu0 %vm6324_vm1, %v6321_v13  ;;  %5597 = vmatprep.subr.mxu1 %v6321_v13 }
 0x27e   : > { %5602 = vmatprep.subr.mxu0 %v6321_v13 }
 0x27f   : > { %5590 = vmatmul.mubr.msk.f32.vlgmr.msra.gmra.mrb[2].mxu1 %vm1148_vm2, %v6756_v20  ;;  %v1528_v28 = vpop.permute.xlu1 %1527  ;;  %5595 = vmatmul.mubr.msk.f32.vlgmr.msra.gmra.mrb[6].mxu0 %vm1148_vm2, %v6748_v17  ;;  %v1604_v29 = vpop.permute.xlu0 %1603 }
 0x280   : > { %5598 = vmatpush3.xpose.msk.msra.mxu1 %vm1148_vm2, %v1528_v28  ;;  %5603 = vmatpush3.xpose.msk.msra.mxu0 %vm1148_vm2, %v1604_v29 }
 0x281   : > { %5599 = vmatprep.mubr.msk.f32.mxu1 %vm6324_vm1, %v6321_v13  ;;  %5604 = vmatprep.mubr.msk.f32.mxu0 %vm6324_vm1, %v6321_v13 }
 0x282   : > { %5607 = vmatprep.subr.mxu1 %v6321_v13  ;;  %5612 = vmatprep.subr.mxu0 %v6321_v13 }
 0x283   : > { %5600 = vmatmul.mubr.msk.f32.vlgmr.msra.gmra.mrb[4].mxu1 %vm1148_vm2, %v6754_v19  ;;  %v1680_v30 = vpop.permute.xlu1 %1679  ;;  %5605 = vmatmul.mubr.msk.f32.vlgmr.msra.gmra.mrb[8].mxu0 %vm1148_vm2, %v6764_v22 }
 0x284   : > { %5608 = vmatpush3.xpose.msk.msra.mxu1 %vm1148_vm2, %v1680_v30  ;;  %5609 = vmatprep.mubr.msk.f32.mxu1 %vm6324_vm1, %v6321_v13 }
 0x285   : > { %5617 = vmatprep.subr.mxu1 %v6321_v13  ;;  %5614 = vmatprep.mubr.msk.f32.mxu0 %vm6324_vm1, %v6321_v13 }
 0x287   : > { %5610 = vmatmul.mubr.msk.f32.vlgmr.msra.gmra.mrb[6].mxu1 %vm1148_vm2, %v6762_v21 }
 0x288   : > { %5619 = vmatprep.mubr.msk.f32.mxu1 %vm6324_vm1, %v6321_v13 }
 0x2e7   : > { %v1295_v31 = vpop.f32.mrb[0].mxu1 }
 0x2e8   : > { %v1219_v32 = vpop.f32.mrb[2].mxu0  ;;  %v5581_v33 = vpop.f32.mrb[1].mxu1  ;;  %v1758_v34 = vsel %vm1148_vm2, %v1295_v31, -inf }
 0x2e9   : > { %v5576_v35 = vpop.f32.mrb[3].mxu0  ;;  %1759 = vmax.xlane.f32.xlu1 %v1758_v34  ;;  %v1755_v36 = vsel %vm1148_vm2, %v1219_v32, -inf }
 0x2ea   : > { %1756 = vmax.xlane.f32.xlu0 %v1755_v36 }
 0x34e   : > { %v1371_v37 = vpop.f32.mrb[4].mxu0 }
 0x34f   : > { %v5586_v38 = vpop.f32.mrb[5].mxu0  ;;  %v1761_v39 = vsel %vm1148_vm2, %v1371_v37, -inf }
 0x350   : > { %1762 = vmax.xlane.f32.xlu0 %v1761_v39 }
 0x352   : > { %v1447_v40 = vpop.f32.mrb[2].mxu1  ;;  %v1523_v41 = vpop.f32.mrb[6].mxu0 }
 0x353   : > { %v5591_v42 = vpop.f32.mrb[3].mxu1  ;;  %v5596_v43 = vpop.f32.mrb[7].mxu0  ;;  %v1764_v44 = vsel %vm1148_vm2, %v1447_v40, -inf  ;;  %v1767_v45 = vsel %vm1148_vm2, %v1523_v41, -inf }
 0x354   : > { %1765 = vmax.xlane.f32.xlu0 %v1764_v44  ;;  %1768 = vmax.xlane.f32.xlu1 %v1767_v45 }
 0x356   : > { %v1599_v46 = vpop.f32.mrb[4].mxu1  ;;  %v1675_v47 = vpop.f32.mrb[8].mxu0 }
 0x357   : > { %v5601_v48 = vpop.f32.mrb[5].mxu1  ;;  %v5606_v49 = vpop.f32.mrb[9].mxu0  ;;  %v1770_v50 = vsel %vm1148_vm2, %v1599_v46, -inf  ;;  %v1773_v51 = vsel %vm1148_vm2, %v1675_v47, -inf }
 0x358   : > { %1771 = vmax.xlane.f32.xlu0 %v1770_v50  ;;  %1774 = vmax.xlane.f32.xlu1 %v1773_v51 }
 0x35a   : > { %v1751_v52 = vpop.f32.mrb[6].mxu1 }
 0x35b   : > { %v5611_v53 = vpop.f32.mrb[7].mxu1  ;;  %v1776_v54 = vsel %vm1148_vm2, %v1751_v52, -inf }
 0x35c   : > { %1777 = vmax.xlane.f32.xlu0 %v1776_v54 }
 0x369   : > { %1843 = vrot.lane.b32.xlu1 %v6724_v15, %s7360_s3 }
 0x36d   : > { %1995 = vrot.lane.b32.xlu1 %v6750_v18, %s7360_s3 }
 0x371   : > { %2071 = vrot.lane.b32.xlu1 %v6756_v20, %s7360_s3 }
 0x372   : > { %1919 = vrot.lane.b32.xlu0 %v6734_v16, %s7360_s3 }
 0x375   : > { %2223 = vrot.lane.b32.xlu1 %v6754_v19, %s7360_s3 }
 0x376   : > { %2147 = vrot.lane.b32.xlu0 %v6748_v17, %s7360_s3  ;;  %v1760_v55 = vpop.xlane.xlu1 %1759 }
 0x377   : > { %v1780_v56 = vsub.f32 %v1295_v31, %v1760_v55  ;;  %v1757_v57 = vpop.xlane.xlu0 %1756 }
 0x378   : > { %v1779_v59 = vsub.f32 %v1219_v32, %v1757_v57 }
 0x379   : > { %v1789_v58 = vmul.f32 1.442695, %v1780_v56 }
 0x37a   : > { %v1787_v60 = vmul.f32 1.442695, %v1779_v59 }
 0x37b   : > { %6027 = vpow2.f32 %v1789_v58 }
 0x37c   : > { %6029 = vpow2.f32 %v1787_v60 }
 0x385   : > { %v6840_v61 = vpop.eup %6027 }
 0x386   : > { %v1806_v62 = vsel %vm1148_vm2, %v6840_v61, 0.0  ;;  %v6844_v63 = vpop.eup %6029 }
 0x387   : > { %v1803_v0 = vsel %vm1148_vm2, %v6844_v63, 0.0 }
 0x395   : > { %1807 = vadd.xlane.f32.xlu0 %v1806_v62 }
 0x399   : > { %1804 = vadd.xlane.f32.xlu1 %v1803_v0 }
 0x3dd   : > { %v1763_v1 = vpop.xlane.xlu0 %1762 }
 0x3de   : > { %v1781_v2 = vsub.f32 %v1371_v37, %v1763_v1 }
 0x3e0   : > { %v1791_v3 = vmul.f32 1.442695, %v1781_v2 }
 0x3e1   : > { %v1769_v4 = vpop.xlane.xlu1 %1768  ;;  %v1766_v5 = vpop.xlane.xlu0 %1765 }
 0x3e2   : > { %6031 = vpow2.f32 %v1791_v3  ;;  %v1783_v6 = vsub.f32 %v1523_v41, %v1769_v4  ;;  %v1782_v7 = vsub.f32 %v1447_v40, %v1766_v5 }
 0x3e4   : > { %v1795_v9 = vmul.f32 1.442695, %v1783_v6  ;;  %v1793_v11 = vmul.f32 1.442695, %v1782_v7  ;;  %v2483_v6 = vld [vmem:[%s6894_s12] sm:$0xff]  ;;  %v2484_v7 = vld [vmem:[%s6894_s12 + $0x8] sm:$0xff] }
 0x3e5   : > { %v1775_v12 = vpop.xlane.xlu1 %1774  ;;  %v1772_v14 = vpop.xlane.xlu0 %1771 }
 0x3e6   : > { %6033 = vpow2.f32 %v1795_v9  ;;  %v1785_v15 = vsub.f32 %v1675_v47, %v1775_v12  ;;  %v1784_v16 = vsub.f32 %v1599_v46, %v1772_v14  ;;  %v5863_v9 = vpack.c.bf16 %v2484_v7, %v2483_v6  ;;  %v2486_v12 = vld [vmem:[%s6894_s12 + $0x18] sm:$0xff]  ;;  %v5333_v7 = vld [vmem:[%s6947_s17] ss:$0 sm:$0xff] }
 0x3e7   : > { %6035 = vpow2.f32 %v1793_v11  ;;  %v2485_v11 = vld [vmem:[%s6894_s12 + $0x10] sm:$0xff] }
 0x3e8   : > { %v1799_v17 = vmul.f32 1.442695, %v1785_v15  ;;  %v1797_v18 = vmul.f32 1.442695, %v1784_v16  ;;  %v5867_v14 = vpack.c.bf16 %v2486_v12, %v2485_v11 }
 0x3e9   : > { %v1844_v19 = vpop.permute.xlu1 %1843  ;;  %v1778_v20 = vpop.xlane.xlu0 %1777 }
 0x3ea   : > { %6037 = vpow2.f32 %v1799_v17  ;;  %v1786_v23 = vsub.f32 %v1751_v52, %v1778_v20  ;;  %5613 = vmatpush3.msra.mxu0 %v1844_v19 }
 0x3eb   : > { %6039 = vpow2.f32 %v1797_v18  ;;  %5622 = vmatprep.subr.mxu0 %v6321_v13 }
 0x3ec   : > { %v6032_v24 = vpop.eup %6031  ;;  %v1801_v25 = vmul.f32 1.442695, %v1786_v23 }
 0x3ed   : > { %v1920_v26 = vpop.permute.xlu0 %1919  ;;  %v1809_v27 = vsel %vm1148_vm2, %v6032_v24, 0.0  ;;  %v1996_v38 = vpop.permute.xlu1 %1995 }
 0x3ee   : > { %6041 = vpow2.f32 %v1801_v25  ;;  %1810 = vadd.xlane.f32.xlu1 %v1809_v27  ;;  %5618 = vmatpush3.msra.mxu1 %v1920_v26 }
 0x3ef   : > { %5627 = vmatprep.subr.mxu1 %v6321_v13 }
 0x3f0   : > { %v6034_v28 = vpop.eup %6033 }
 0x3f1   : > { %v6036_v29 = vpop.eup %6035  ;;  %v1815_v30 = vsel %vm1148_vm2, %v6034_v28, 0.0  ;;  %v2072_v39 = vpop.permute.xlu1 %2071 }
 0x3f2   : > { %1816 = vadd.xlane.f32.xlu1 %v1815_v30  ;;  %v1812_v31 = vsel %vm1148_vm2, %v6036_v29, 0.0  ;;  %v2148_v40 = vpop.permute.xlu0 %2147 }
 0x3f3   : > { %1813 = vadd.xlane.f32.xlu0 %v1812_v31 }
 0x3f4   : > { %v6038_v32 = vpop.eup %6037 }
 0x3f5   : > { %v6040_v33 = vpop.eup %6039  ;;  %v1821_v34 = vsel %vm1148_vm2, %v6038_v32, 0.0  ;;  %v2224_v41 = vpop.permute.xlu1 %2223 }
 0x3f6   : > { %1822 = vadd.xlane.f32.xlu1 %v1821_v34  ;;  %v1818_v35 = vsel %vm1148_vm2, %v6040_v33, 0.0 }
 0x3f7   : > { %1819 = vadd.xlane.f32.xlu0 %v1818_v35 }
 0x3f8   : > { %v6855_v36 = vpop.eup %6041 }
 0x3f9   : > { %v1824_v37 = vsel %vm1148_vm2, %v6855_v36, 0.0 }
 0x3fb   : > { %1825 = vadd.xlane.f32.xlu0 %v1824_v37 }
 0x407   : > { %2375 = vrot.lane.b32.xlu1 %v6762_v21, %s7360_s3 }
 0x411   : > { %2299 = vrot.lane.b32.xlu0 %v6764_v22, %s7360_s3 }
 0x422   : > { %v1808_v42 = vpop.xlane.xlu0 %1807 }
 0x423   : > { %6043 = vrcp.f32 %v1808_v42 }
 0x426   : > { %v1805_v43 = vpop.xlane.xlu1 %1804 }
 0x427   : > { %6045 = vrcp.f32 %v1805_v43 }
 0x42d   : > { %v6044_v44 = vpop.eup %6043 }
 0x42e   : > { %v1836_v45 = vmul.f32 %v6044_v44, %v6840_v61 }
 0x430   : > { %5620 = vmatmul.mubr.msk.f32.vlgmr.msra.gmra.mrb[8].mxu1 %vm1148_vm2, %v1836_v45 }
 0x431   : > { %v6046_v46 = vpop.eup %6045  ;;  %5628 = vmatpush3.msra.mxu1 %v2072_v39  ;;  %5629 = vmatprep.mubr.msk.f32.mxu1 %vm6324_vm1, %v6321_v13 }
 0x432   : > { %v1835_v21 = vmul.f32 %v6046_v46, %v6844_v63  ;;  %5637 = vmatprep.subr.mxu1 %v6321_v13 }
 0x434   : > { %5615 = vmatmul.mubr.msk.f32.vlgmr.msra.gmra.mrb[10].mxu0 %vm1148_vm2, %v1835_v21 }
 0x435   : > { %5623 = vmatpush3.msra.mxu0 %v1996_v38  ;;  %5624 = vmatprep.mubr.msk.f32.mxu0 %vm6324_vm1, %v6321_v13 }
 0x436   : > { %5632 = vmatprep.subr.mxu0 %v6321_v13 }
 0x47b   : > { %v1811_v22 = vpop.xlane.xlu1 %1810 }
 0x47c   : > { %6047 = vrcp.f32 %v1811_v22 }
 0x47f   : > { %v1817_v47 = vpop.xlane.xlu1 %1816 }
 0x480   : > { %6049 = vrcp.f32 %v1817_v47  ;;  %v1814_v48 = vpop.xlane.xlu0 %1813 }
 0x481   : > { %6051 = vrcp.f32 %v1814_v48 }
 0x483   : > { %v1823_v49 = vpop.xlane.xlu1 %1822 }
 0x484   : > { %6053 = vrcp.f32 %v1823_v49  ;;  %v1820_v50 = vpop.xlane.xlu0 %1819 }
 0x485   : > { %6055 = vrcp.f32 %v1820_v50 }
 0x486   : > { %v6048_v51 = vpop.eup %6047 }
 0x487   : > { %v1837_v52 = vmul.f32 %v6048_v51, %v6032_v24  ;;  %v2376_v63 = vpop.permute.xlu1 %2375 }
 0x488   : > { %v1826_v53 = vpop.xlane.xlu0 %1825 }
 0x489   : > { %6057 = vrcp.f32 %v1826_v53  ;;  %5625 = vmatmul.mubr.msk.f32.vlgmr.msra.gmra.mrb[12].mxu0 %vm1148_vm2, %v1837_v52 }
 0x48a   : > { %v6050_v54 = vpop.eup %6049  ;;  %5633 = vmatpush3.msra.mxu0 %v2148_v40  ;;  %5634 = vmatprep.mubr.msk.f32.mxu0 %vm6324_vm1, %v6321_v13 }
 0x48b   : > { %v6052_v55 = vpop.eup %6051  ;;  %v1839_v56 = vmul.f32 %v6050_v54, %v6034_v28  ;;  %5642 = vmatprep.subr.mxu0 %v6321_v13 }
 0x48c   : > { %v1838_v57 = vmul.f32 %v6052_v55, %v6036_v29  ;;  %v2300_v58 = vpop.permute.xlu0 %2299 }
 0x48d   : > { %5635 = vmatmul.mubr.msk.f32.vlgmr.msra.gmra.mrb[14].mxu0 %vm1148_vm2, %v1839_v56 }
 0x48e   : > { %v6054_v59 = vpop.eup %6053  ;;  %5630 = vmatmul.mubr.msk.f32.vlgmr.msra.gmra.mrb[10].mxu1 %vm1148_vm2, %v1838_v57  ;;  %5643 = vmatpush3.msra.mxu0 %v2300_v58 }
 0x48f   : > { %v6056_v60 = vpop.eup %6055  ;;  %v1841_v61 = vmul.f32 %v6054_v59, %v6038_v32  ;;  %5638 = vmatpush3.msra.mxu1 %v2224_v41  ;;  %5639 = vmatprep.mubr.msk.f32.mxu1 %vm6324_vm1, %v6321_v13 }
 0x490   : > { %v1840_v62 = vmul.f32 %v6056_v60, %v6040_v33  ;;  %5644 = vmatprep.mubr.msk.f32.mxu0 %vm6324_vm1, %v6321_v13  ;;  %5647 = vmatprep.subr.mxu1 %v6321_v13 }
 0x491   : > { %5645 = vmatmul.mubr.msk.f32.vlgmr.msra.gmra.mrb[16].mxu0 %vm1148_vm2, %v1841_v61  ;;  %5864 = vmatprep.subr.bf16.mxu0 %v5863_v9 }
 0x492   : > { %5640 = vmatmul.mubr.msk.f32.vlgmr.msra.gmra.mrb[12].mxu1 %vm1148_vm2, %v1840_v62  ;;  %5866 = vmatpush3.bf16.msra.mxu0 %v5863_v9 }
 0x493   : > { %v6058_v0 = vpop.eup %6057  ;;  %5648 = vmatpush3.msra.mxu1 %v2376_v63  ;;  %5649 = vmatprep.mubr.msk.f32.mxu1 %vm6324_vm1, %v6321_v13 }
 0x494   : > { %v1842_v1 = vmul.f32 %v6058_v0, %v6855_v36  ;;  %5868 = vmatprep.subr.bf16.mxu0 %v5867_v14 }
 0x496   : > { %5650 = vmatmul.mubr.msk.f32.vlgmr.msra.gmra.mrb[14].mxu1 %vm1148_vm2, %v1842_v1  ;;  %5870 = vmatpush3.bf16.msra.mxu0 %v5867_v14 }
 0x503   : > { %v1991_v2 = vpop.f32.mrb[8].mxu1 }
 0x504   : > { %v5621_v3 = vpop.f32.mrb[9].mxu1 }
 0x507   : > { %v1915_v4 = vpop.f32.mrb[10].mxu0 }
 0x508   : > { %v5616_v5 = vpop.f32.mrb[11].mxu0 }
 0x509   : > { %v5332_v5 = vld [vmem:[%s6941_s29] ss:$0 sm:$0xff] }
 0x55c   : > { %v2067_v15 = vpop.f32.mrb[12].mxu0 }
 0x55d   : > { %v5626_v16 = vpop.f32.mrb[13].mxu0  ;;  %2453 = vrot.lane.b32.xlu0 %v2067_v15, %s7358_s0 }
 0x560   : > { %v2219_v17 = vpop.f32.mrb[14].mxu0 }
 0x561   : > { %v2143_v18 = vpop.f32.mrb[10].mxu1  ;;  %2461 = vrot.lane.b32.xlu0 %v2219_v17, %s7356_s28  ;;  %v5636_v19 = vpop.f32.mrb[15].mxu0 }
 0x562   : > { %2455 = vrot.lane.b32.xlu1 %v2143_v18, %s7358_s0  ;;  %v5631_v20 = vpop.f32.mrb[11].mxu1  ;;  %s6972_s0 = scalar_lea.vmem %s7408_s7, %s6713_s4 }
 0x564   : > { %v2371_v23 = vpop.f32.mrb[16].mxu0 }
 0x565   : > { %v2295_v24 = vpop.f32.mrb[12].mxu1  ;;  %2469 = vrot.lane.b32.xlu0 %v2371_v23, %s7354_s25  ;;  %v5646_v25 = vpop.f32.mrb[17].mxu0 }
 0x566   : > { %2463 = vrot.lane.b32.xlu1 %v2295_v24, %s7356_s28  ;;  %v5641_v26 = vpop.f32.mrb[13].mxu1  ;;  %s6931_s28 = scalar_lea.vmem %s7407_s6, %s6690_s27  ;;  %s5426_s27 = sshll.u32 %s6687_s30, 7 }
 0x567   : > { %v2623_v57 = vld [vmem:[%s6931_s28 + $0x8] sm:$0xff]  ;;  %v2624_v59 = vld [vmem:[%s6931_s28 + $0x10] sm:$0xff]  ;;  %v2625_v60 = vld [vmem:[%s6931_s28 + $0x18] sm:$0xff]  ;;  %s6957_s19 = scalar_lea.vmem %s7327_s8, %s5426_s27  ;;  %s7410_s6 = sld [smem:[#allocation30_spill]] }
 0x568   : > { %v5875_v61 = vpack.c.bf16 %v2625_v60, %v2624_v59  ;;  %v2724_v17 = vld [vmem:[%s6957_s19] sm:$0xff]  ;;  %v2725_v18 = vld [vmem:[%s6957_s19 + $0x8] sm:$0xff]  ;;  %v2726_v20 = vld [vmem:[%s6957_s19 + $0x10] sm:$0xff]  ;;  %s7417_s27 = smov 16  }
 0x569   : > { %v2447_v27 = vpop.f32.mrb[14].mxu1  ;;  %v5879_v19 = vpack.c.bf16 %v2725_v18, %v2724_v17  ;;  %v2727_v23 = vld [vmem:[%s6957_s19 + $0x18] sm:$0xff]  ;;  %v2728_v25 = vld [vmem:[%s6957_s19 + $0x20] sm:$0xff]  ;;  %v2729_v26 = vld [vmem:[%s6957_s19 + $0x28] sm:$0xff] }
 0x56a   : > { %2471 = vrot.lane.b32.xlu1 %v2447_v27, %s7354_s25  ;;  %v5651_v28 = vpop.f32.mrb[15].mxu1  ;;  %s6918_s25 = scalar_lea.vmem %s7406_s5, %s6713_s4  ;;  %v5883_v24 = vpack.c.bf16 %v2727_v23, %v2726_v20  ;;  %v5887_v27 = vpack.c.bf16 %v2729_v26, %v2728_v25  ;;  %s7411_s5 = smov 120  }
 0x56b   : > { %v5329_v41 = vld [vmem:[%s6918_s25] ss:$0 sm:$0xff]  ;;  %5880 = vmatprep.subr.bf16.mxu0 %v5879_v19  ;;  %v2730_v28 = vld [vmem:[%s6957_s19 + $0x30] sm:$0xff] }
 0x56d   : > { %s7005_s7 = scalar_lea.vmem %s7410_s6, %s6713_s4  ;;  %s7412_s6 = smov 104  }
 0x56e   : > { %v5341_v17 = vld [vmem:[%s7005_s7] ss:$0 sm:$0xff] }
 0x5cf   : > { %v2454_v29 = vpop.permute.xlu0 %2453 }
 0x5d0   : > { %v2475_v32 = vsel %vm1148_vm2, %v1915_v4, %v2454_v29  ;;  %v2731_v29 = vld [vmem:[%s6957_s19 + $0x38] sm:$0xff] }
 0x5d3   : > { %v2462_v30 = vpop.permute.xlu0 %2461 }
 0x5d4   : > { %v2456_v31 = vpop.permute.xlu1 %2455  ;;  %v2478_v33 = vsel %vm2477_vm3, %v2475_v32, %v2462_v30  ;;  %v5891_v30 = vpack.c.bf16 %v2731_v29, %v2730_v28 }
 0x5d5   : > { %v2476_v37 = vsel %vm1148_vm2, %v1991_v2, %v2456_v31  ;;  %v5334_v31 = vld [vmem:[%s6972_s0] ss:$0 sm:$0xff] }
 0x5d7   : > { %v2470_v34 = vpop.permute.xlu0 %2469 }
 0x5d8   : > { %v2464_v35 = vpop.permute.xlu1 %2463  ;;  %v2481_v36 = vsel %vm2480_vm4, %v2478_v33, %v2470_v34 }
 0x5d9   : > { %5660 = vmatprep.mubr.msk.f32.mxu0 %vm1050_vm0, %v2481_v36  ;;  %v2479_v38 = vsel %vm2477_vm3, %v2476_v37, %v2464_v35 }
 0x5dc   : > { %v2472_v39 = vpop.permute.xlu1 %2471 }
 0x5dd   : > { %v2482_v40 = vsel %vm2480_vm4, %v2479_v38, %v2472_v39 }
 0x5de   : > { %5661 = vmatmul.mubr.msk.f32.vlgmr.msra.gmra.mrb[18].mxu0 %vm1050_vm0, %v2482_v40 }
 0x5df   : > { %5882 = vmatpush3.bf16.msra.mxu0 %v5879_v19 }
 0x5e0   : > { %5884 = vmatprep.subr.bf16.mxu0 %v5883_v24 }
 0x5e3   : > { %5886 = vmatpush3.bf16.msra.mxu0 %v5883_v24  ;;  %v5347_v24 = vld [vmem:[%s6719_s14 + $0x1] ss:$0 sm:$0xff]  ;;  %s7415_s14 = smov 64  }
 0x5e4   : > { %5888 = vmatprep.subr.bf16.mxu0 %v5887_v27 }
 0x5e7   : > { %5890 = vmatpush3.bf16.msra.mxu0 %v5887_v27 }
 0x5e8   : > { %5892 = vmatprep.subr.bf16.mxu0 %v5891_v30 }
 0x5eb   : > { %5894 = vmatpush3.bf16.msra.mxu0 %v5891_v30 }
 0x5ec   : > { %5714 = vmatprep.subr.mxu0 %v6321_v13 }
 0x6b1   : > { %v5662_v42 = vpop.f32.mrb[18].mxu0 }
 0x6b2   : > { %v2572_v43 = vadd.f32 %v5662_v42, %v5329_v41  ;;  %v2566_v44 = vpop.f32.mrb[19].mxu0 }
 0x6b3   : > { %v2567_v45 = vadd.f32 %v5329_v41, %v2566_v44 }
 0x6b4   : > { %v2576_v46 = vadd.f32 %v2572_v43, %v6708_v10  ;;  %v2622_v10 = vld [vmem:[%s6931_s28] sm:$0xff] }
 0x6b5   : > { %v2575_v21 = vadd.f32 %v2567_v45, %v6703_v8  ;;  %v5871_v58 = vpack.c.bf16 %v2623_v57, %v2622_v10 }
 0x6b6   : > { %v2582_v22 = vsel %vm1050_vm0, %v2576_v46, 0.0 }
 0x6b7   : > { %2583 = vadd.xlane.f32.xlu1 %v2582_v22  ;;  %v2579_v47 = vsel %vm1050_vm0, %v2575_v21, 0.0  ;;  %5872 = vmatprep.subr.bf16.mxu1 %v5871_v58 }
 0x6b8   : > { %2580 = vadd.xlane.f32.xlu0 %v2579_v47  ;;  %5874 = vmatpush3.bf16.msra.mxu1 %v5871_v58 }
 0x6b9   : > { %5876 = vmatprep.subr.bf16.mxu1 %v5875_v61 }
 0x6bc   : > { %5878 = vmatpush3.bf16.msra.mxu1 %v5875_v61  ;;  %v5342_v61 = vld [vmem:[%s6696_s20 + $0x20] sm:$0xff] }
 0x744   : > { %v2584_v48 = vpop.xlane.xlu1 %2583 }
 0x745   : > { %v2587_v49 = vmul.f32 0.03125, %v2584_v48  ;;  %v2581_v50 = vpop.xlane.xlu0 %2580 }
 0x746   : > { %v2586_v51 = vmul.f32 0.03125, %v2581_v50 }
 0x747   : > { %v2589_v52 = vsub.f32 %v2576_v46, %v2587_v49  ;;  %v5337_v46 = vld [vmem:[%s6983_s21] ss:$0 sm:$0xff] }
 0x748   : > { %v2588_v53 = vsub.f32 %v2575_v21, %v2586_v51 }
 0x749   : > { %v2591_v56 = vmul.f32 %v2589_v52, %v2589_v52 }
 0x74a   : > { %v2590_v54 = vmul.f32 %v2588_v53, %v2588_v53 }
 0x74b   : > { %v2595_v8 = vsel %vm1050_vm0, %v2591_v56, 0.0 }
 0x74c   : > { %v2592_v55 = vsel %vm1050_vm0, %v2590_v54, 0.0 }
 0x74d   : > { %2593 = vadd.xlane.f32.xlu0 %v2592_v55 }
 0x751   : > { %2596 = vadd.xlane.f32.xlu0 %v2595_v8 }
 0x7da   : > { %v2594_v62 = vpop.xlane.xlu0 %2593 }
 0x7db   : > { %v2598_v63 = vmul.f32 0.03125, %v2594_v62  ;;  %v5343_v62 = vld [vmem:[%s6696_s20 + $0x28] sm:$0xff] }
 0x7dd   : > { %v2600_v0 = vadd.f32 1e-05, %v2598_v63  ;;  %v5895_v63 = vpack.c.bf16 %v5343_v62, %v5342_v61 }
 0x7de   : > { %v2597_v1 = vpop.xlane.xlu0 %2596 }
 0x7df   : > { %6059 = vrsqrt.f32 %v2600_v0  ;;  %v2599_v2 = vmul.f32 0.03125, %v2597_v1  ;;  %v5344_v0 = vld [vmem:[%s6696_s20 + $0x30] sm:$0xff]  ;;  %v5345_v1 = vld [vmem:[%s6696_s20 + $0x38] sm:$0xff]  ;;  %5896 = vmatprep.subr.bf16.mxu1 %v5895_v63  ;;  %s6999_s20 = scalar_lea.vmem %s7409_s26, %s6713_s4  ;;  %s7413_s4 = smov 112  }
 0x7e0   : > { %s7416_s26 = smov 8  }
 0x7e1   : > { %v2601_v3 = vadd.f32 1e-05, %v2599_v2  ;;  %v5899_v2 = vpack.c.bf16 %v5345_v1, %v5344_v0 }
 0x7e3   : > { %6061 = vrsqrt.f32 %v2601_v3 }
 0x7e9   : > { %v6060_v4 = vpop.eup %6059 }
 0x7ea   : > { %v2604_v6 = vmul.f32 %v6060_v4, %v2588_v53 }
 0x7ec   : > { %v2612_v9 = vmul.f32 %v5332_v5, %v2604_v6 }
 0x7ed   : > { %v6062_v11 = vpop.eup %6061 }
 0x7ee   : > { %v2605_v12 = vmul.f32 %v6062_v11, %v2589_v52  ;;  %v2620_v14 = vadd.f32 %v5333_v7, %v2612_v9 }
 0x7f0   : > { %v2613_v15 = vmul.f32 %v5332_v5, %v2605_v12  ;;  %5671 = vmatprep.mubr.msk.f32.mxu1 %vm1050_vm0, %v2620_v14  ;;  %v5340_v12 = vld [vmem:[%s6999_s20] ss:$0 sm:$0xff] }
 0x7f2   : > { %v2621_v16 = vadd.f32 %v5333_v7, %v2613_v15 }
 0x7f4   : > { %5672 = vmatmul.mubr.msk.f32.vlgmr.msra.gmra.mrb[16].mxu1 %vm1050_vm0, %v2621_v16 }
 0x7f5   : > { %5898 = vmatpush3.bf16.msra.mxu1 %v5895_v63 }
 0x7f6   : > { %5900 = vmatprep.subr.bf16.mxu1 %v5899_v2 }
 0x7f9   : > { %5902 = vmatpush3.bf16.msra.mxu1 %v5899_v2 }
 0x7fa   : > { %5704 = vmatprep.subr.mxu1 %v6321_v13 }
 0x8c7   : > { %v5673_v32 = vpop.f32.mrb[16].mxu1 }
 0x8c8   : > { %v2711_v33 = vadd.f32 %v5673_v32, %v5334_v31  ;;  %v2705_v34 = vpop.f32.mrb[17].mxu1 }
 0x8c9   : > { %v2706_v35 = vadd.f32 %v5334_v31, %v2705_v34 }
 0x8ca   : > { %v2717_v36 = vmul.f32 0.70710677, %v2711_v33  ;;  %v2715_v43 = vmul.f32 0.5, %v2711_v33 }
 0x8cb   : > { %v2716_v37 = vmul.f32 0.70710677, %v2706_v35  ;;  %v2714_v41 = vmul.f32 0.5, %v2706_v35 }
 0x8cc   : > { %6063 = verf.f32 %v2717_v36 }
 0x8cd   : > { %6065 = verf.f32 %v2716_v37 }
 0x8d6   : > { %v6064_v38 = vpop.eup %6063 }
 0x8d7   : > { %v6066_v39 = vpop.eup %6065  ;;  %v2721_v40 = vadd.f32 1.0, %v6064_v38 }
 0x8d8   : > { %v2720_v42 = vadd.f32 1.0, %v6066_v39 }
 0x8d9   : > { %v2723_v45 = vmul.f32 %v2721_v40, %v2715_v43 }
 0x8da   : > { %v2722_v44 = vmul.f32 %v2720_v42, %v2714_v41 }
 0x8dc   : > { %5690 = vmatprep.mubr.msk.f32.mxu0 %vm2739_vm5, %v2722_v44 }
 0x8dd   : > { %5691 = vmatmul.mubr.msk.f32.vlgmr.msra.gmra.mrb[20].mxu0 %vm2739_vm5, %v2723_v45 }
 0x8de   : > { %5716 = vmatprep.mubr.msk.f32.mxu0 %vm6324_vm1, %v6321_v13 }
 0x9b0   : > { %v5692_v21 = vpop.f32.mrb[20].mxu0 }
 0x9b1   : > { %v2818_v22 = vadd.f32 %v5692_v21, %v5337_v46  ;;  %v2812_v47 = vpop.f32.mrb[21].mxu0 }
 0x9b2   : > { %v2813_v48 = vadd.f32 %v5337_v46, %v2812_v47 }
 0x9b3   : > { %v2822_v49 = vadd.f32 %v2818_v22, %v2621_v16 }
 0x9b4   : > { %v2821_v50 = vadd.f32 %v2813_v48, %v2620_v14 }
 0x9b5   : > { %v2828_v51 = vsel %vm1050_vm0, %v2822_v49, 0.0 }
 0x9b6   : > { %2829 = vadd.xlane.f32.xlu0 %v2828_v51  ;;  %v2825_v52 = vsel %vm1050_vm0, %v2821_v50, 0.0 }
 0x9b7   : > { %2826 = vadd.xlane.f32.xlu1 %v2825_v52 }
 0xa43   : > { %v2830_v53 = vpop.xlane.xlu0 %2829 }
 0xa44   : > { %v2832_v54 = vmul.f32 0.03125, %v2830_v53  ;;  %v2827_v55 = vpop.xlane.xlu1 %2826 }
 0xa45   : > { %v2831_v56 = vmul.f32 0.03125, %v2827_v55 }
 0xa46   : > { %v2834_v8 = vsub.f32 %v2822_v49, %v2832_v54 }
 0xa47   : > { %v2833_v10 = vsub.f32 %v2821_v50, %v2831_v56 }
 0xa48   : > { %v2836_v57 = vmul.f32 %v2834_v8, %v2834_v8 }
 0xa49   : > { %v2835_v58 = vmul.f32 %v2833_v10, %v2833_v10 }
 0xa4a   : > { %v2840_v59 = vsel %vm1050_vm0, %v2836_v57, 0.0 }
 0xa4b   : > { %2841 = vadd.xlane.f32.xlu0 %v2840_v59  ;;  %v2837_v60 = vsel %vm1050_vm0, %v2835_v58, 0.0 }
 0xa4c   : > { %2838 = vadd.xlane.f32.xlu1 %v2837_v60 }
 0xad8   : > { %v2842_v3 = vpop.xlane.xlu0 %2841 }
 0xad9   : > { %v2844_v4 = vmul.f32 0.03125, %v2842_v3  ;;  %v2839_v5 = vpop.xlane.xlu1 %2838 }
 0xada   : > { %v2843_v6 = vmul.f32 0.03125, %v2839_v5 }
 0xadb   : > { %v2846_v7 = vadd.f32 1e-05, %v2844_v4 }
 0xadc   : > { %v2845_v9 = vadd.f32 1e-05, %v2843_v6 }
 0xadd   : > { %6067 = vrsqrt.f32 %v2846_v7 }
 0xade   : > { %6069 = vrsqrt.f32 %v2845_v9 }
 0xae7   : > { %v6068_v11 = vpop.eup %6067 }
 0xae8   : > { %v6070_v14 = vpop.eup %6069  ;;  %v2850_v15 = vmul.f32 %v6068_v11, %v2834_v8 }
 0xae9   : > { %v2849_v16 = vmul.f32 %v6070_v14, %v2833_v10 }
 0xaea   : > { %v2858_v18 = vmul.f32 %v5340_v12, %v2850_v15 }
 0xaeb   : > { %v2857_v19 = vmul.f32 %v5340_v12, %v2849_v16 }
 0xaec   : > { %v7011_v23 = vadd.f32 %v5341_v17, %v2858_v18 }
 0xaed   : > { %v7009_v20 = vadd.f32 %v5341_v17, %v2857_v19 }
 0xaef   : > { %5701 = vmatprep.mubr.msk.f32.mxu1 %vm1050_vm0, %v7009_v20 }
 0xaf0   : > { %5702 = vmatmul.mubr.msk.f32.vlgmr.msra.gmra.mrb[18].mxu1 %vm1050_vm0, %v7011_v23 }
 0xaf1   : > { %5706 = vmatprep.mubr.msk.f32.mxu1 %vm6324_vm1, %v6321_v13 }
 0xbc3   : > { %v5703_v25 = vpop.f32.mrb[18].mxu1 }
 0xbc4   : > { %v7020_v26 = vadd.f32 %v5703_v25, %v5347_v24  ;;  %v2952_v27 = vpop.f32.mrb[19].mxu1 }
 0xbc5   : > { %v7022_v28 = vadd.f32 %v5347_v24, %v2952_v27 }
 0xbc6   : > { %2965 = vrot.lane.b32.xlu0 %v7020_v26, %s7411_s5 }
 0xbc7   : > { %2963 = vrot.lane.b32.xlu1 %v7022_v28, %s7411_s5 }
 0xbca   : > { %2971 = vrot.lane.b32.xlu0 %v7022_v28, %s7412_s6 }
 0xbcb   : > { %2967 = vrot.lane.b32.xlu1 %v7022_v28, %s7413_s4 }
 0xbce   : > { %2975 = vrot.lane.b32.xlu0 %v7022_v28, %s7414_s23 }
 0xbcf   : > { %2969 = vrot.lane.b32.xlu1 %v7020_v26, %s7413_s4 }
 0xbd3   : > { %2973 = vrot.lane.b32.xlu1 %v7020_v26, %s7412_s6  ;;  %s5285_s6 = sshll.u32 %s6658_s15, 1 }
 0xbd7   : > { %3051 = vrot.lane.b32.xlu1 %v7020_v26, %s7414_s23 }
 0xc38   : > { %v7040_v29 = vpop.permute.xlu0 %2965 }
 0xc39   : > { %3203 = vrot.lane.b32.xlu1 %v7040_v29, %s7414_s23  ;;  %v7044_v30 = vpop.permute.xlu1 %2963 }
 0xc3a   : > { %3127 = vrot.lane.b32.xlu0 %v7044_v30, %s7414_s23 }
 0xc3c   : > { %v7048_v31 = vpop.permute.xlu0 %2971 }
 0xc3d   : > { %v7050_v32 = vpop.permute.xlu1 %2967 }
 0xc3e   : > { %3279 = vrot.lane.b32.xlu0 %v7050_v32, %s7414_s23 }
 0xc40   : > { %v2976_v33 = vpop.permute.xlu0 %2975 }
 0xc41   : > { %5705 = vmatpush3.xpose.msk.msra.mxu1 %vm1148_vm2, %v2976_v33  ;;  %v7055_v34 = vpop.permute.xlu1 %2969 }
 0xc42   : > { %3431 = vrot.lane.b32.xlu0 %v7048_v31, %s7414_s23  ;;  %3355 = vrot.lane.b32.xlu1 %v7055_v34, %s7414_s23 }
 0xc43   : > { %5709 = vmatprep.subr.mxu1 %v6321_v13 }
 0xc44   : > { %5707 = vmatmul.mubr.msk.f32.vlgmr.msra.gmra.mrb[20].mxu1 %vm1148_vm2, %v7022_v28 }
 0xc45   : > { %v7064_v35 = vpop.permute.xlu1 %2973  ;;  %5711 = vmatprep.mubr.msk.f32.mxu1 %vm6324_vm1, %v6321_v13 }
 0xc46   : > { %3507 = vrot.lane.b32.xlu1 %v7064_v35, %s7414_s23 }
 0xc49   : > { %v3052_v36 = vpop.permute.xlu1 %3051 }
 0xc4a   : > { %5710 = vmatpush3.xpose.msk.msra.mxu1 %vm1148_vm2, %v3052_v36 }
 0xc4b   : > { %5719 = vmatprep.subr.mxu1 %v6321_v13 }
 0xc4d   : > { %5712 = vmatmul.mubr.msk.f32.vlgmr.msra.gmra.mrb[22].mxu1 %vm1148_vm2, %v7020_v26 }
 0xc4e   : > { %5721 = vmatprep.mubr.msk.f32.mxu1 %vm6324_vm1, %v6321_v13 }
 0xcab   : > { %v3204_v37 = vpop.permute.xlu1 %3203 }
 0xcac   : > { %v3128_v38 = vpop.permute.xlu0 %3127  ;;  %5720 = vmatpush3.xpose.msk.msra.mxu1 %vm1148_vm2, %v3204_v37 }
 0xcad   : > { %5715 = vmatpush3.xpose.msk.msra.mxu0 %vm1148_vm2, %v3128_v38  ;;  %5729 = vmatprep.subr.mxu1 %v6321_v13 }
 0xcae   : > { %5724 = vmatprep.subr.mxu0 %v6321_v13 }
 0xcaf   : > { %5722 = vmatmul.mubr.msk.f32.vlgmr.msra.gmra.mrb[24].mxu1 %vm1148_vm2, %v7040_v29 }
 0xcb0   : > { %5717 = vmatmul.mubr.msk.f32.vlgmr.msra.gmra.mrb[22].mxu0 %vm1148_vm2, %v7044_v30  ;;  %v3280_v39 = vpop.permute.xlu0 %3279  ;;  %5731 = vmatprep.mubr.msk.f32.mxu1 %vm6324_vm1, %v6321_v13 }
 0xcb1   : > { %5725 = vmatpush3.xpose.msk.msra.mxu0 %vm1148_vm2, %v3280_v39  ;;  %5726 = vmatprep.mubr.msk.f32.mxu0 %vm6324_vm1, %v6321_v13 }
 0xcb2   : > { %5734 = vmatprep.subr.mxu0 %v6321_v13 }
 0xcb4   : > { %5727 = vmatmul.mubr.msk.f32.vlgmr.msra.gmra.mrb[24].mxu0 %vm1148_vm2, %v7050_v32  ;;  %v3432_v40 = vpop.permute.xlu0 %3431  ;;  %v3356_v41 = vpop.permute.xlu1 %3355 }
 0xcb5   : > { %5730 = vmatpush3.xpose.msk.msra.mxu1 %vm1148_vm2, %v3356_v41  ;;  %5735 = vmatpush3.xpose.msk.msra.mxu0 %vm1148_vm2, %v3432_v40 }
 0xcb6   : > { %5736 = vmatprep.mubr.msk.f32.mxu0 %vm6324_vm1, %v6321_v13  ;;  %5739 = vmatprep.subr.mxu1 %v6321_v13 }
 0xcb7   : > { %5744 = vmatprep.subr.mxu0 %v6321_v13 }
 0xcb8   : > { %5732 = vmatmul.mubr.msk.f32.vlgmr.msra.gmra.mrb[26].mxu1 %vm1148_vm2, %v7055_v34  ;;  %5737 = vmatmul.mubr.msk.f32.vlgmr.msra.gmra.mrb[26].mxu0 %vm1148_vm2, %v7048_v31  ;;  %v3508_v42 = vpop.permute.xlu1 %3507 }
 0xcb9   : > { %5740 = vmatpush3.xpose.msk.msra.mxu1 %vm1148_vm2, %v3508_v42  ;;  %5741 = vmatprep.mubr.msk.f32.mxu1 %vm6324_vm1, %v6321_v13 }
 0xcba   : > { %5749 = vmatprep.subr.mxu1 %v6321_v13  ;;  %5746 = vmatprep.mubr.msk.f32.mxu0 %vm6324_vm1, %v6321_v13 }
 0xcbc   : > { %5742 = vmatmul.mubr.msk.f32.vlgmr.msra.gmra.mrb[28].mxu1 %vm1148_vm2, %v7064_v35 }
 0xcbd   : > { %5751 = vmatprep.mubr.msk.f32.mxu1 %vm6324_vm1, %v6321_v13 }
 0xd17   : > { %v3047_v43 = vpop.f32.mrb[20].mxu1 }
 0xd18   : > { %v5708_v44 = vpop.f32.mrb[21].mxu1  ;;  %v3583_v45 = vsel %vm1148_vm2, %v3047_v43, -inf }
 0xd19   : > { %3584 = vmax.xlane.f32.xlu0 %v3583_v45 }
 0xd20   : > { %v3123_v46 = vpop.f32.mrb[22].mxu1 }
 0xd21   : > { %v5713_v21 = vpop.f32.mrb[23].mxu1  ;;  %v3586_v22 = vsel %vm1148_vm2, %v3123_v46, -inf }
 0xd22   : > { %3587 = vmax.xlane.f32.xlu1 %v3586_v22 }
 0xd82   : > { %v3275_v47 = vpop.f32.mrb[24].mxu1 }
 0xd83   : > { %v3199_v48 = vpop.f32.mrb[22].mxu0  ;;  %v5723_v49 = vpop.f32.mrb[25].mxu1  ;;  %v3592_v55 = vsel %vm1148_vm2, %v3275_v47, -inf }
 0xd84   : > { %v5718_v50 = vpop.f32.mrb[23].mxu0  ;;  %v3589_v51 = vsel %vm1148_vm2, %v3199_v48, -inf }
 0xd85   : > { %3590 = vmax.xlane.f32.xlu0 %v3589_v51 }
 0xd87   : > { %v3351_v52 = vpop.f32.mrb[24].mxu0 }
 0xd88   : > { %v5728_v53 = vpop.f32.mrb[25].mxu0  ;;  %v3595_v54 = vsel %vm1148_vm2, %v3351_v52, -inf }
 0xd89   : > { %3596 = vmax.xlane.f32.xlu1 %v3595_v54  ;;  %3593 = vmax.xlane.f32.xlu0 %v3592_v55 }
 0xd8b   : > { %v3427_v56 = vpop.f32.mrb[26].mxu1  ;;  %v3503_v8 = vpop.f32.mrb[26].mxu0 }
 0xd8c   : > { %v5733_v10 = vpop.f32.mrb[27].mxu1  ;;  %v5738_v57 = vpop.f32.mrb[27].mxu0  ;;  %v3601_v58 = vsel %vm1148_vm2, %v3503_v8, -inf  ;;  %v3598_v59 = vsel %vm1148_vm2, %v3427_v56, -inf }
 0xd8d   : > { %3602 = vmax.xlane.f32.xlu1 %v3601_v58  ;;  %3599 = vmax.xlane.f32.xlu0 %v3598_v59 }
 0xd8f   : > { %v3579_v60 = vpop.f32.mrb[28].mxu1 }
 0xd90   : > { %v5743_v61 = vpop.f32.mrb[29].mxu1  ;;  %v3604_v62 = vsel %vm1148_vm2, %v3579_v60, -inf }
 0xd91   : > { %3605 = vmax.xlane.f32.xlu0 %v3604_v62 }
 0xd9e   : > { %3671 = vrot.lane.b32.xlu1 %v7022_v28, %s7415_s14 }
 0xda2   : > { %3823 = vrot.lane.b32.xlu1 %v7044_v30, %s7415_s14 }
 0xda6   : > { %3899 = vrot.lane.b32.xlu1 %v7040_v29, %s7415_s14  ;;  %v3585_v1 = vpop.xlane.xlu0 %3584 }
 0xda7   : > { %3747 = vrot.lane.b32.xlu0 %v7020_v26, %s7415_s14  ;;  %v3607_v2 = vsub.f32 %v3047_v43, %v3585_v1 }
 0xda9   : > { %v3615_v4 = vmul.f32 1.442695, %v3607_v2 }
 0xdaa   : > { %4051 = vrot.lane.b32.xlu1 %v7055_v34, %s7415_s14 }
 0xdab   : > { %3975 = vrot.lane.b32.xlu0 %v7050_v32, %s7415_s14 }
 0xdaf   : > { %v3588_v63 = vpop.xlane.xlu1 %3587 }
 0xdb0   : > { %v3608_v0 = vsub.f32 %v3123_v46, %v3588_v63 }
 0xdb2   : > { %v3617_v3 = vmul.f32 1.442695, %v3608_v0 }
 0xdb4   : > { %6071 = vpow2.f32 %v3617_v3 }
 0xdb5   : > { %6073 = vpow2.f32 %v3615_v4 }
 0xdbe   : > { %v7132_v5 = vpop.eup %6071 }
 0xdbf   : > { %v3634_v6 = vsel %vm1148_vm2, %v7132_v5, 0.0  ;;  %v7136_v7 = vpop.eup %6073 }
 0xdc0   : > { %v3631_v9 = vsel %vm1148_vm2, %v7136_v7, 0.0 }
 0xdca   : > { %3635 = vadd.xlane.f32.xlu0 %v3634_v6 }
 0xdce   : > { %3632 = vadd.xlane.f32.xlu1 %v3631_v9 }
 0xe12   : > { %v3591_v11 = vpop.xlane.xlu0 %3590 }
 0xe13   : > { %v3609_v12 = vsub.f32 %v3199_v48, %v3591_v11 }
 0xe15   : > { %v3619_v14 = vmul.f32 1.442695, %v3609_v12 }
 0xe16   : > { %v3594_v15 = vpop.xlane.xlu0 %3593  ;;  %v3597_v16 = vpop.xlane.xlu1 %3596 }
 0xe17   : > { %6075 = vpow2.f32 %v3619_v14  ;;  %v3610_v17 = vsub.f32 %v3275_v47, %v3594_v15  ;;  %v3611_v18 = vsub.f32 %v3351_v52, %v3597_v16 }
 0xe19   : > { %v3621_v19 = vmul.f32 1.442695, %v3610_v17  ;;  %v3623_v24 = vmul.f32 1.442695, %v3611_v18  ;;  %v5374_v17 = vld [vmem:[%s6894_s12 + $0x20] sm:$0xff]  ;;  %v5375_v18 = vld [vmem:[%s6894_s12 + $0x28] sm:$0xff] }
 0xe1a   : > { %v3600_v25 = vpop.xlane.xlu0 %3599  ;;  %v3603_v26 = vpop.xlane.xlu1 %3602 }
 0xe1b   : > { %6077 = vpow2.f32 %v3621_v19  ;;  %v3612_v27 = vsub.f32 %v3427_v56, %v3600_v25  ;;  %v3613_v28 = vsub.f32 %v3503_v8, %v3603_v26  ;;  %v5903_v19 = vpack.c.bf16 %v5375_v18, %v5374_v17  ;;  %v5377_v25 = vld [vmem:[%s6894_s12 + $0x38] sm:$0xff]  ;;  %v5385_v18 = vld [vmem:[%s6947_s17 + $0x1] ss:$0 sm:$0xff]  ;;  %s7419_s17 = sld [smem:[#allocation31_spill]] }
 0xe1c   : > { %6079 = vpow2.f32 %v3623_v24  ;;  %v5376_v24 = vld [vmem:[%s6894_s12 + $0x30] sm:$0xff]  ;;  %s7418_s12 = smov 24  }
 0xe1d   : > { %v3625_v29 = vmul.f32 1.442695, %v3612_v27  ;;  %v3627_v30 = vmul.f32 1.442695, %v3613_v28  ;;  %v5907_v26 = vpack.c.bf16 %v5377_v25, %v5376_v24 }
 0xe1e   : > { %v3606_v32 = vpop.xlane.xlu0 %3605  ;;  %v3672_v33 = vpop.permute.xlu1 %3671 }
 0xe1f   : > { %6081 = vpow2.f32 %v3625_v29  ;;  %v3614_v34 = vsub.f32 %v3579_v60, %v3606_v32  ;;  %5745 = vmatpush3.msra.mxu0 %v3672_v33 }
 0xe20   : > { %6083 = vpow2.f32 %v3627_v30  ;;  %5754 = vmatprep.subr.mxu0 %v6321_v13 }
 0xe21   : > { %v6076_v36 = vpop.eup %6075  ;;  %v3629_v37 = vmul.f32 1.442695, %v3614_v34 }
 0xe22   : > { %v3748_v38 = vpop.permute.xlu0 %3747  ;;  %v3637_v39 = vsel %vm1148_vm2, %v6076_v36, 0.0  ;;  %v3824_v48 = vpop.permute.xlu1 %3823 }
 0xe23   : > { %6085 = vpow2.f32 %v3629_v37  ;;  %3638 = vadd.xlane.f32.xlu1 %v3637_v39  ;;  %5750 = vmatpush3.msra.mxu1 %v3748_v38 }
 0xe24   : > { %5759 = vmatprep.subr.mxu1 %v6321_v13 }
 0xe25   : > { %v6078_v40 = vpop.eup %6077 }
 0xe26   : > { %v6080_v41 = vpop.eup %6079  ;;  %v3640_v42 = vsel %vm1148_vm2, %v6078_v40, 0.0  ;;  %v3900_v49 = vpop.permute.xlu1 %3899 }
 0xe27   : > { %3641 = vadd.xlane.f32.xlu0 %v3640_v42  ;;  %v3643_v43 = vsel %vm1148_vm2, %v6080_v41, 0.0  ;;  %v3976_v50 = vpop.permute.xlu0 %3975 }
 0xe28   : > { %3644 = vadd.xlane.f32.xlu1 %v3643_v43 }
 0xe29   : > { %v6082_v44 = vpop.eup %6081 }
 0xe2a   : > { %v6084_v45 = vpop.eup %6083  ;;  %v3646_v46 = vsel %vm1148_vm2, %v6082_v44, 0.0  ;;  %v4052_v51 = vpop.permute.xlu1 %4051 }
 0xe2b   : > { %3647 = vadd.xlane.f32.xlu0 %v3646_v46  ;;  %v3649_v21 = vsel %vm1148_vm2, %v6084_v45, 0.0 }
 0xe2c   : > { %3650 = vadd.xlane.f32.xlu1 %v3649_v21 }
 0xe2d   : > { %v7147_v22 = vpop.eup %6085 }
 0xe2e   : > { %v3652_v47 = vsel %vm1148_vm2, %v7147_v22, 0.0 }
 0xe2f   : > { %3653 = vadd.xlane.f32.xlu0 %v3652_v47 }
 0xe3d   : > { %4203 = vrot.lane.b32.xlu1 %v7064_v35, %s7415_s14 }
 0xe45   : > { %4127 = vrot.lane.b32.xlu0 %v7048_v31, %s7415_s14  ;;  %s7423_s14 = sld [smem:[#allocation34_spill]] }
 0xe57   : > { %v3636_v52 = vpop.xlane.xlu0 %3635 }
 0xe58   : > { %6087 = vrcp.f32 %v3636_v52 }
 0xe5b   : > { %v3633_v53 = vpop.xlane.xlu1 %3632 }
 0xe5c   : > { %6089 = vrcp.f32 %v3633_v53 }
 0xe62   : > { %v6088_v54 = vpop.eup %6087 }
 0xe63   : > { %v3664_v55 = vmul.f32 %v6088_v54, %v7132_v5 }
 0xe65   : > { %5752 = vmatmul.mubr.msk.f32.vlgmr.msra.gmra.mrb[30].mxu1 %vm1148_vm2, %v3664_v55 }
 0xe66   : > { %v6090_v56 = vpop.eup %6089  ;;  %5760 = vmatpush3.msra.mxu1 %v3900_v49  ;;  %5761 = vmatprep.mubr.msk.f32.mxu1 %vm6324_vm1, %v6321_v13 }
 0xe67   : > { %v3663_v31 = vmul.f32 %v6090_v56, %v7136_v7  ;;  %5769 = vmatprep.subr.mxu1 %v6321_v13 }
 0xe69   : > { %5747 = vmatmul.mubr.msk.f32.vlgmr.msra.gmra.mrb[28].mxu0 %vm1148_vm2, %v3663_v31 }
 0xe6a   : > { %5755 = vmatpush3.msra.mxu0 %v3824_v48  ;;  %5756 = vmatprep.mubr.msk.f32.mxu0 %vm6324_vm1, %v6321_v13 }
 0xe6b   : > { %5764 = vmatprep.subr.mxu0 %v6321_v13 }
 0xeb0   : > { %v3639_v35 = vpop.xlane.xlu1 %3638 }
 0xeb1   : > { %6091 = vrcp.f32 %v3639_v35 }
 0xeb4   : > { %v3642_v8 = vpop.xlane.xlu0 %3641 }
 0xeb5   : > { %6093 = vrcp.f32 %v3642_v8  ;;  %v3645_v10 = vpop.xlane.xlu1 %3644 }
 0xeb6   : > { %6095 = vrcp.f32 %v3645_v10 }
 0xeb8   : > { %v3648_v57 = vpop.xlane.xlu0 %3647 }
 0xeb9   : > { %6097 = vrcp.f32 %v3648_v57  ;;  %v3651_v58 = vpop.xlane.xlu1 %3650 }
 0xeba   : > { %6099 = vrcp.f32 %v3651_v58 }
 0xebb   : > { %v6092_v59 = vpop.eup %6091 }
 0xebc   : > { %v3665_v60 = vmul.f32 %v6092_v59, %v6076_v36  ;;  %v3654_v61 = vpop.xlane.xlu0 %3653 }
 0xebd   : > { %6101 = vrcp.f32 %v3654_v61  ;;  %v4204_v7 = vpop.permute.xlu1 %4203 }
 0xebe   : > { %5757 = vmatmul.mubr.msk.f32.vlgmr.msra.gmra.mrb[30].mxu0 %vm1148_vm2, %v3665_v60 }
 0xebf   : > { %v6094_v62 = vpop.eup %6093  ;;  %5765 = vmatpush3.msra.mxu0 %v3976_v50  ;;  %5766 = vmatprep.mubr.msk.f32.mxu0 %vm6324_vm1, %v6321_v13 }
 0xec0   : > { %v6096_v63 = vpop.eup %6095  ;;  %v3666_v0 = vmul.f32 %v6094_v62, %v6078_v40  ;;  %5774 = vmatprep.subr.mxu0 %v6321_v13  ;;  %v4128_v2 = vpop.permute.xlu0 %4127 }
 0xec1   : > { %v3667_v1 = vmul.f32 %v6096_v63, %v6080_v41 }
 0xec2   : > { %5762 = vmatmul.mubr.msk.f32.vlgmr.msra.gmra.mrb[32].mxu1 %vm1148_vm2, %v3666_v0  ;;  %v5386_v0 = vld [vmem:[%s6931_s28 + $0x20] sm:$0xff] }
 0xec3   : > { %v6098_v3 = vpop.eup %6097  ;;  %5767 = vmatmul.mubr.msk.f32.vlgmr.msra.gmra.mrb[32].mxu0 %vm1148_vm2, %v3667_v1  ;;  %5770 = vmatpush3.msra.mxu1 %v4052_v51  ;;  %v5379_v51 = vld [vmem:[%s6918_s25 + $0x1] ss:$0 sm:$0xff]  ;;  %v5387_v1 = vld [vmem:[%s6931_s28 + $0x28] sm:$0xff]  ;;  %s4937_s25 = scalar_lea.sflag [#allocation4], %s6658_s15 }
 0xec4   : > { %v6100_v4 = vpop.eup %6099  ;;  %v3668_v5 = vmul.f32 %v6098_v3, %v6082_v44  ;;  %5775 = vmatpush3.msra.mxu0 %v4128_v2  ;;  %5771 = vmatprep.mubr.msk.f32.mxu1 %vm6324_vm1, %v6321_v13  ;;  %v5911_v2 = vpack.c.bf16 %v5387_v1, %v5386_v0  ;;  %v5388_v3 = vld [vmem:[%s6931_s28 + $0x30] sm:$0xff] }
 0xec5   : > { %v3669_v6 = vmul.f32 %v6100_v4, %v6084_v45  ;;  %5776 = vmatprep.mubr.msk.f32.mxu0 %vm6324_vm1, %v6321_v13  ;;  %5779 = vmatprep.subr.mxu1 %v6321_v13  ;;  %v5389_v4 = vld [vmem:[%s6931_s28 + $0x38] sm:$0xff]  ;;  %s1024_s28 = scalar_lea.vmem %s7419_s17, %s6687_s30 }
 0xec6   : > { %5772 = vmatmul.mubr.msk.f32.vlgmr.msra.gmra.mrb[34].mxu1 %vm1148_vm2, %v3668_v5  ;;  %5904 = vmatprep.subr.bf16.mxu0 %v5903_v19  ;;  %v5915_v5 = vpack.c.bf16 %v5389_v4, %v5388_v3 }
 0xec7   : > { %v6102_v9 = vpop.eup %6101  ;;  %5777 = vmatmul.mubr.msk.f32.vlgmr.msra.gmra.mrb[34].mxu0 %vm1148_vm2, %v3669_v6  ;;  %5780 = vmatpush3.msra.mxu1 %v4204_v7 }
 0xec8   : > { %v3670_v11 = vmul.f32 %v6102_v9, %v7147_v22  ;;  %5781 = vmatprep.mubr.msk.f32.mxu1 %vm6324_vm1, %v6321_v13  ;;  %5906 = vmatpush3.bf16.msra.mxu0 %v5903_v19 }
 0xec9   : > { %5908 = vmatprep.subr.bf16.mxu0 %v5907_v26  ;;  %5912 = vmatprep.subr.bf16.mxu1 %v5911_v2 }
 0xeca   : > { %5782 = vmatmul.mubr.msk.f32.vlgmr.msra.gmra.mrb[36].mxu1 %vm1148_vm2, %v3670_v11 }
 0xecb   : > { %5914 = vmatpush3.bf16.msra.mxu1 %v5911_v2 }
 0xecc   : > { %5910 = vmatpush3.bf16.msra.mxu0 %v5907_v26  ;;  %5916 = vmatprep.subr.bf16.mxu1 %v5915_v5 }
 0xecf   : > { %5918 = vmatpush3.bf16.msra.mxu1 %v5915_v5 }
 0xf38   : > { %v3819_v12 = vpop.f32.mrb[30].mxu1 }
 0xf39   : > { %v5753_v14 = vpop.f32.mrb[31].mxu1 }
 0xf3c   : > { %v3743_v15 = vpop.f32.mrb[28].mxu0 }
 0xf3d   : > { %v5748_v16 = vpop.f32.mrb[29].mxu0 }
 0xf3e   : > { %v5384_v16 = vld [vmem:[%s6941_s29 + $0x1] ss:$0 sm:$0xff]  ;;  %s7420_s29 = sld [smem:[#allocation32_spill]] }
 0xf91   : > { %v3895_v27 = vpop.f32.mrb[30].mxu0 }
 0xf92   : > { %4281 = vrot.lane.b32.xlu0 %v3895_v27, %s7416_s26  ;;  %v5758_v28 = vpop.f32.mrb[31].mxu0 }
 0xf95   : > { %v3971_v29 = vpop.f32.mrb[32].mxu1 }
 0xf96   : > { %v4047_v30 = vpop.f32.mrb[32].mxu0  ;;  %4283 = vrot.lane.b32.xlu1 %v3971_v29, %s7416_s26  ;;  %v5763_v32 = vpop.f32.mrb[33].mxu1  ;;  %v5394_v29 = vld [vmem:[%s6957_s19 + $0x40] sm:$0xff]  ;;  %s1033_s26 = scalar_lea.vmem %s7423_s14, %s6687_s30 }
 0xf97   : > { %4289 = vrot.lane.b32.xlu0 %v4047_v30, %s7417_s27  ;;  %v5768_v33 = vpop.f32.mrb[33].mxu0  ;;  %v5395_v30 = vld [vmem:[%s6957_s19 + $0x48] sm:$0xff] }
 0xf98   : > { %v5919_v32 = vpack.c.bf16 %v5395_v30, %v5394_v29  ;;  %v5396_v33 = vld [vmem:[%s6957_s19 + $0x50] sm:$0xff] }
 0xf99   : > { %v4123_v34 = vpop.f32.mrb[34].mxu1 }
 0xf9a   : > { %v4199_v36 = vpop.f32.mrb[34].mxu0  ;;  %4291 = vrot.lane.b32.xlu1 %v4123_v34, %s7417_s27  ;;  %v5773_v37 = vpop.f32.mrb[35].mxu1  ;;  %5920 = vmatprep.subr.bf16.mxu0 %v5919_v32  ;;  %v5397_v34 = vld [vmem:[%s6957_s19 + $0x58] sm:$0xff]  ;;  %s5417_s27 = sshll.u32 %s6459_s2, 5  ;;  %s6332_s2 = smov [#allocation10]  }
 0xf9b   : > { %4297 = vrot.lane.b32.xlu0 %v4199_v36, %s7418_s12  ;;  %v5778_v38 = vpop.f32.mrb[35].mxu0  ;;  %v5923_v36 = vpack.c.bf16 %v5397_v34, %v5396_v33  ;;  %v5398_v37 = vld [vmem:[%s6957_s19 + $0x60] sm:$0xff] }
 0xf9c   : > { %v5399_v38 = vld [vmem:[%s6957_s19 + $0x68] sm:$0xff] }
 0xf9d   : > { %v4275_v39 = vpop.f32.mrb[36].mxu1 }
 0xf9e   : > { %4299 = vrot.lane.b32.xlu1 %v4275_v39, %s7418_s12  ;;  %v5783_v40 = vpop.f32.mrb[37].mxu1  ;;  %v5927_v39 = vpack.c.bf16 %v5399_v38, %v5398_v37  ;;  %s969_s12 = scalar_lea.vmem [#allocation10], %s5285_s6 }
 0xf9f   : > { %v5400_v40 = vld [vmem:[%s6957_s19 + $0x70] sm:$0xff] }
0x1004   : > { %v4282_v41 = vpop.permute.xlu0 %4281 }
0x1005   : > { %v4303_v44 = vsel %vm1148_vm2, %v3743_v15, %v4282_v41  ;;  %v5401_v41 = vld [vmem:[%s6957_s19 + $0x78] sm:$0xff]  ;;  %s1027_s19 = scalar_lea.vmem %s7420_s29, %s6687_s30  ;;  %s6243_s29 = sshll.u32 %s6332_s2, 4  ;;  %s6244_s29 = int_to_ptr.vmem [resolvable:$false] %s6243_s29 }
0x1008   : > { %v4284_v42 = vpop.permute.xlu1 %4283 }
0x1009   : > { %v4290_v43 = vpop.permute.xlu0 %4289  ;;  %v4304_v47 = vsel %vm1148_vm2, %v3819_v12, %v4284_v42  ;;  %v5931_v42 = vpack.c.bf16 %v5401_v41, %v5400_v40 }
0x100a   : > { %v4305_v46 = vsel %vm2477_vm3, %v4303_v44, %v4290_v43  ;;  %v5391_v43 = vld [vmem:[%s6972_s0 + $0x1] ss:$0 sm:$0xff] }
0x100c   : > { %v4292_v45 = vpop.permute.xlu1 %4291 }
0x100d   : > { %v4298_v21 = vpop.permute.xlu0 %4297  ;;  %v4306_v48 = vsel %vm2477_vm3, %v4304_v47, %v4292_v45 }
0x100e   : > { %v4307_v22 = vsel %vm2480_vm4, %v4305_v46, %v4298_v21 }
0x100f   : > { %5792 = vmatprep.mubr.msk.f32.mxu0 %vm1050_vm0, %v4307_v22 }
0x1010   : > { %v4300_v49 = vpop.permute.xlu1 %4299 }
0x1011   : > { %v4308_v50 = vsel %vm2480_vm4, %v4306_v48, %v4300_v49 }
0x1012   : > { %5793 = vmatmul.mubr.msk.f32.vlgmr.msra.gmra.mrb[36].mxu0 %vm1050_vm0, %v4308_v50 }
0x1013   : > { %5922 = vmatpush3.bf16.msra.mxu0 %v5919_v32 }
0x1014   : > { %5924 = vmatprep.subr.bf16.mxu0 %v5923_v36 }
0x1017   : > { %5926 = vmatpush3.bf16.msra.mxu0 %v5923_v36 }
0x1018   : > { %5928 = vmatprep.subr.bf16.mxu0 %v5927_v39 }
0x101b   : > { %5930 = vmatpush3.bf16.msra.mxu0 %v5927_v39 }
0x101c   : > { %5932 = vmatprep.subr.bf16.mxu0 %v5931_v42 }
0x101f   : > { %5934 = vmatpush3.bf16.msra.mxu0 %v5931_v42 }
0x10e5   : > { %v5794_v52 = vpop.f32.mrb[36].mxu0 }
0x10e6   : > { %v4400_v53 = vadd.f32 %v5794_v52, %v5379_v51  ;;  %v4394_v54 = vpop.f32.mrb[37].mxu0 }
0x10e7   : > { %v4395_v55 = vadd.f32 %v5379_v51, %v4394_v54 }
0x10e8   : > { %v4404_v56 = vadd.f32 %v4400_v53, %v7011_v23 }
0x10e9   : > { %v4403_v31 = vadd.f32 %v4395_v55, %v7009_v20 }
0x10ea   : > { %v4412_v35 = vsel %vm1050_vm0, %v4404_v56, 0.0 }
0x10eb   : > { %4413 = vadd.xlane.f32.xlu1 %v4412_v35  ;;  %v4409_v8 = vsel %vm1050_vm0, %v4403_v31, 0.0 }
0x10ec   : > { %4410 = vadd.xlane.f32.xlu0 %v4409_v8 }
0x1178   : > { %v4414_v10 = vpop.xlane.xlu1 %4413 }
0x1179   : > { %v4416_v57 = vmul.f32 0.03125, %v4414_v10  ;;  %v4411_v58 = vpop.xlane.xlu0 %4410 }
0x117a   : > { %v4415_v59 = vmul.f32 0.03125, %v4411_v58 }
0x117b   : > { %v4418_v60 = vsub.f32 %v4404_v56, %v4416_v57  ;;  %v5403_v56 = vld [vmem:[%s6983_s21 + $0x1] ss:$0 sm:$0xff] }
0x117c   : > { %v4417_v61 = vsub.f32 %v4403_v31, %v4415_v59 }
0x117d   : > { %v4420_v20 = vmul.f32 %v4418_v60, %v4418_v60 }
0x117e   : > { %v4419_v62 = vmul.f32 %v4417_v61, %v4417_v61 }
0x117f   : > { %v4424_v63 = vsel %vm1050_vm0, %v4420_v20, 0.0 }
0x1180   : > { %v4421_v23 = vsel %vm1050_vm0, %v4419_v62, 0.0 }
0x1181   : > { %4422 = vadd.xlane.f32.xlu0 %v4421_v23 }
0x1185   : > { %4425 = vadd.xlane.f32.xlu0 %v4424_v63 }
0x120e   : > { %v4423_v6 = vpop.xlane.xlu0 %4422 }
0x120f   : > { %v4427_v7 = vmul.f32 0.03125, %v4423_v6 }
0x1211   : > { %v4429_v9 = vadd.f32 1e-05, %v4427_v7 }
0x1212   : > { %v4426_v11 = vpop.xlane.xlu0 %4425 }
0x1213   : > { %6103 = vrsqrt.f32 %v4429_v9  ;;  %v4428_v12 = vmul.f32 0.03125, %v4426_v11 }
0x1215   : > { %v4430_v14 = vadd.f32 1e-05, %v4428_v12 }
0x1217   : > { %6105 = vrsqrt.f32 %v4430_v14 }
0x121d   : > { %v6104_v15 = vpop.eup %6103 }
0x121e   : > { %v4433_v17 = vmul.f32 %v6104_v15, %v4417_v61  ;;  %v5408_v15 = vld [vmem:[%s6999_s20 + $0x1] ss:$0 sm:$0xff]  ;;  %s7421_s20 = sld [smem:[#allocation33_spill]] }
0x1220   : > { %v4441_v19 = vmul.f32 %v5384_v16, %v4433_v17 }
0x1221   : > { %v6106_v24 = vpop.eup %6105 }
0x1222   : > { %v4434_v25 = vmul.f32 %v6106_v24, %v4418_v60  ;;  %v4449_v26 = vadd.f32 %v5385_v18, %v4441_v19 }
0x1224   : > { %v4442_v27 = vmul.f32 %v5384_v16, %v4434_v25  ;;  %5803 = vmatprep.mubr.msk.f32.mxu1 %vm1050_vm0, %v4449_v26  ;;  %s1030_s5 = scalar_lea.vmem %s7421_s20, %s6687_s30 }
0x1226   : > { %v4450_v28 = vadd.f32 %v5385_v18, %v4442_v27  ;;  %v5409_v18 = vld [vmem:[%s7005_s7 + $0x1] ss:$0 sm:$0xff]  ;;  %s4950_s7 = sshll.u32 %s969_s12, 4  ;;  %s7277_s7 = int_to_ptr.vmem [resolvable:$true] %s4950_s7 }
0x1227   : > { %s6239_s30 = scalar_lea.vmem %s7277_s7, 32  ;;  %p6246_p4 = scmp.lt.s32.totalorder %s7277_s7, %s6244_s29 }
0x1228   : > { %5804 = vmatmul.mubr.msk.f32.vlgmr.msra.gmra.mrb[38].mxu1 %vm1050_vm0, %v4450_v28  ;;  %p6240_p12 = scmp.ne.s32.totalorder %s7277_s7, %s6239_s30 }
0x1229   : > { %5833 = vmatprep.mubr.msk.f32.mxu1 %vm6324_vm1, %v6321_v13 }
0x12fb   : > { %v5805_v44 = vpop.f32.mrb[38].mxu1 }
0x12fc   : > { %v4542_v45 = vadd.f32 %v5805_v44, %v5391_v43  ;;  %v4536_v46 = vpop.f32.mrb[39].mxu1  ;;  %v4756_v44 = vld [vmem:[%s6676_s13 + $0x8] sm:$0xff] }
0x12fd   : > { %v4537_v21 = vadd.f32 %v5391_v43, %v4536_v46  ;;  %v4755_v43 = vld [vmem:[%s6676_s13] sm:$0xff]  ;;  %v6331_v46 = vmov 0.0|0.0  }
0x12fe   : > { %v4548_v22 = vmul.f32 0.70710677, %v4542_v45  ;;  %v4546_v53 = vmul.f32 0.5, %v4542_v45  ;;  %v4757_v45 = vld [vmem:[%s6676_s13 + $0x10] sm:$0xff]  ;;  %5935 = vmatprep.subr.bf16.mxu1 %v6331_v46 }
0x12ff   : > { %v4547_v47 = vmul.f32 0.70710677, %v4537_v21  ;;  %v4545_v51 = vmul.f32 0.5, %v4537_v21  ;;  %v5936_v21 = vpack.c.bf16 %v4756_v44, %v4755_v43 }
0x1300   : > { %6107 = verf.f32 %v4548_v22  ;;  %v4758_v22 = vld [vmem:[%s6676_s13 + $0x18] sm:$0xff] }
0x1301   : > { %6109 = verf.f32 %v4547_v47  ;;  %5937 = vmatpush3.bf16.msra.mxu1 %v5936_v21  ;;  %v5939_v47 = vpack.c.bf16 %v4758_v22, %v4757_v45 }
0x1302   : > { %5938 = vmatprep.subr.bf16.mxu1 %v6331_v46 }
0x1305   : > { %5940 = vmatpush3.bf16.msra.mxu1 %v5939_v47 }
0x1306   : > { %5941 = vmatprep.subr.bf16.mxu1 %v6331_v46 }
0x130a   : > { %v6108_v48 = vpop.eup %6107 }
0x130b   : > { %v6110_v49 = vpop.eup %6109  ;;  %v4552_v50 = vadd.f32 1.0, %v6108_v48 }
0x130c   : > { %v4551_v52 = vadd.f32 1.0, %v6110_v49 }
0x130d   : > { %v4554_v55 = vmul.f32 %v4552_v50, %v4546_v53 }
0x130e   : > { %v4553_v54 = vmul.f32 %v4551_v52, %v4545_v51 }
0x1310   : > { %5822 = vmatprep.mubr.msk.f32.mxu0 %vm2739_vm5, %v4553_v54  ;;  %v5410_v54 = vld [vmem:[%s1024_s28] ss:$0 sm:$0xff]  ;;  %s7424_s28 = sld [smem:[#allocation35_spill]] }
0x1311   : > { %5823 = vmatmul.mubr.msk.f32.vlgmr.msra.gmra.mrb[38].mxu0 %vm2739_vm5, %v4554_v55 }
0x1316   : > { %s7275_s13 = scalar_lea.hbm %s7424_s28, %s5417_s27 }
0x13e4   : > { %v5824_v31 = vpop.f32.mrb[38].mxu0 }
0x13e5   : > { %v4650_v35 = vadd.f32 %v5824_v31, %v5403_v56  ;;  %v4644_v8 = vpop.f32.mrb[39].mxu0 }
0x13e6   : > { %v4645_v10 = vadd.f32 %v5403_v56, %v4644_v8 }
0x13e7   : > { %v4654_v57 = vadd.f32 %v4650_v35, %v4450_v28  ;;  %v5411_v35 = vld [vmem:[%s1027_s19] ss:$0 sm:$0xff]  ;;  %s6245_s19 = scalar_lea.vmem %s6244_s29, 64 }
0x13e8   : > { %v4653_v58 = vadd.f32 %v4645_v10, %v4449_v26  ;;  %p6247_p3 = scmp.lt.s32.totalorder %s6245_s19, %s6239_s30 }
0x13e9   : > { %v4662_v59 = vsel %vm1050_vm0, %v4654_v57, 0.0 }
0x13ea   : > { %4663 = vadd.xlane.f32.xlu1 %v4662_v59  ;;  %v4659_v60 = vsel %vm1050_vm0, %v4653_v58, 0.0  ;;  %v4847_v59 = vld [vmem:[%s6679_s1] sm:$0xff]  ;;  %p6248_p5 = por %p6247_p3, %p6246_p4 }
0x13eb   : > { %4660 = vadd.xlane.f32.xlu0 %v4659_v60  ;;  %v4848_v60 = vld [vmem:[%s6679_s1 + $0x8] sm:$0xff] }
0x1477   : > { %v4664_v61 = vpop.xlane.xlu1 %4663 }
0x1478   : > { %v4666_v62 = vmul.f32 0.03125, %v4664_v61  ;;  %v4661_v23 = vpop.xlane.xlu0 %4660  ;;  %v5942_v61 = vpack.c.bf16 %v4848_v60, %v4847_v59 }
0x1479   : > { %v4665_v20 = vmul.f32 0.03125, %v4661_v23  ;;  %v4850_v23 = vld [vmem:[%s6679_s1 + $0x18] sm:$0xff] }
0x147a   : > { %v4668_v63 = vsub.f32 %v4654_v57, %v4666_v62  ;;  %v4849_v62 = vld [vmem:[%s6679_s1 + $0x10] sm:$0xff] }
0x147b   : > { %v4667_v0 = vsub.f32 %v4653_v58, %v4665_v20  ;;  %v5945_v20 = vpack.c.bf16 %v4850_v23, %v4849_v62 }
0x147c   : > { %v4670_v1 = vmul.f32 %v4668_v63, %v4668_v63 }
0x147d   : > { %v4669_v2 = vmul.f32 %v4667_v0, %v4667_v0 }
0x147e   : > { %v4674_v3 = vsel %vm1050_vm0, %v4670_v1, 0.0 }
0x147f   : > { %4675 = vadd.xlane.f32.xlu1 %v4674_v3  ;;  %v4671_v4 = vsel %vm1050_vm0, %v4669_v2, 0.0  ;;  %v4853_v2 = vld [vmem:[%s6679_s1 + $0x30] sm:$0xff] }
0x1480   : > { %4672 = vadd.xlane.f32.xlu0 %v4671_v4  ;;  %v5412_v4 = vld [vmem:[%s1030_s5] ss:$0 sm:$0xff] }
0x150c   : > { %v4676_v5 = vpop.xlane.xlu1 %4675 }
0x150d   : > { %v4678_v6 = vmul.f32 0.03125, %v4676_v5  ;;  %v4673_v7 = vpop.xlane.xlu0 %4672 }
0x150e   : > { %v4677_v9 = vmul.f32 0.03125, %v4673_v7 }
0x150f   : > { %v4680_v11 = vadd.f32 1e-05, %v4678_v6 }
0x1510   : > { %v4679_v12 = vadd.f32 1e-05, %v4677_v9 }
0x1511   : > { %6111 = vrsqrt.f32 %v4680_v11 }
0x1512   : > { %6113 = vrsqrt.f32 %v4679_v12 }
0x151b   : > { %v6112_v14 = vpop.eup %6111 }
0x151c   : > { %v6114_v16 = vpop.eup %6113  ;;  %v4684_v17 = vmul.f32 %v6112_v14, %v4668_v63  ;;  %v4851_v63 = vld [vmem:[%s6679_s1 + $0x20] sm:$0xff] }
0x151d   : > { %v4683_v19 = vmul.f32 %v6114_v16, %v4667_v0  ;;  %v4852_v0 = vld [vmem:[%s6679_s1 + $0x28] sm:$0xff]  ;;  %v5414_v16 = vld [vmem:[%s1033_s26] ss:$0 sm:$0xff] }
0x151e   : > { %v4692_v24 = vmul.f32 %v5408_v15, %v4684_v17  ;;  %v5948_v1 = vpack.c.bf16 %v4852_v0, %v4851_v63 }
0x151f   : > { %v4691_v25 = vmul.f32 %v5408_v15, %v4683_v19 }
0x1520   : > { %v4700_v26 = vadd.f32 %v5409_v18, %v4692_v24 }
0x1521   : > { %v4699_v27 = vadd.f32 %v5409_v18, %v4691_v25 }
0x1522   : > { %v4705_v28 = vrot.slane %v4700_v26, 7 }
0x1524   : > { %v4707_v29 = vsel %vm4706_vm6, %v4705_v28, %v4699_v27 }
0x1525   : > { %v4710_v30 = vsel %vm4709_vm7, %v4707_v29, 0.0 }
0x1526   : > { %4711 = vadd.xlane.f32.xlu1 %v4710_v30 }
0x15b3   : > { %v4712_v32 = vpop.xlane.xlu1 %4711 }
0x15b4   : > { %v4713_v33 = vmul.f32 0.03125, %v4712_v32 }
0x15b6   : > { %v4715_v34 = vrot.slane %v4713_v33, 1  ;;  %v4718_v36 = vsub.f32 %v4699_v27, %v4713_v33 }
0x15b8   : > { %v4719_v37 = vsub.f32 %v4700_v26, %v4715_v34  ;;  %v4720_v39 = vmul.f32 %v4718_v36, %v4718_v36 }
0x15ba   : > { %v4721_v38 = vmul.f32 %v4719_v37, %v4719_v37 }
0x15bc   : > { %v4724_v40 = vrot.slane %v4721_v38, 7 }
0x15be   : > { %v4725_v41 = vsel %vm4706_vm6, %v4724_v40, %v4720_v39 }
0x15bf   : > { %v4727_v42 = vsel %vm4709_vm7, %v4725_v41, 0.0 }
0x15c0   : > { %4728 = vadd.xlane.f32.xlu0 %v4727_v42 }
0x164d   : > { %v4729_v48 = vpop.xlane.xlu0 %4728 }
0x164e   : > { %v4730_v49 = vmul.f32 0.03125, %v4729_v48 }
0x1650   : > { %v4731_v50 = vadd.f32 1e-05, %v4730_v49 }
0x1652   : > { %6115 = vrsqrt.f32 %v4731_v50 }
0x165c   : > { %v6116_v51 = vpop.eup %6115 }
0x165d   : > { %v4734_v52 = vrot.slane %v6116_v51, 1  ;;  %v4737_v53 = vmul.f32 %v6116_v51, %v4718_v36 }
0x165f   : > { %v4738_v55 = vmul.f32 %v4734_v52, %v4719_v37  ;;  %v4745_v56 = vmul.f32 %v5410_v54, %v4737_v53 }
0x1661   : > { %v4746_v31 = vmul.f32 %v5410_v54, %v4738_v55  ;;  %v4753_v10 = vadd.f32 %v5411_v35, %v4745_v56 }
0x1663   : > { %v4754_v8 = vadd.f32 %v5411_v35, %v4746_v31 }
0x1665   : > { %v4768_v57 = vrot.slane %v4754_v8, 7 }
0x1667   : > { %v4769_v58 = vsel %vm4706_vm6, %v4768_v57, %v4753_v10 }
0x1668   : > { %5834 = vmatmul.mubr.msk.f32.vlgmr.msra.gmra.mrb[40].mxu1 %vm1050_vm0, %v4769_v58 }
0x1669   : > { %5852 = vmatprep.mubr.msk.f32.mxu1 %vm6324_vm1, %v6321_v13  ;;  %5943 = vmatpush3.bf16.msra.mxu1 %v5942_v61  ;;  %v4854_v13 = vld [vmem:[%s6679_s1 + $0x38] sm:$0xff]  ;;  %s7422_s1 = sld [smem:[#allocation19_spill]] }
0x166a   : > { %5944 = vmatprep.subr.bf16.mxu1 %v6331_v46  ;;  %v5951_v3 = vpack.c.bf16 %v4854_v13, %v4853_v2 }
0x166d   : > { %5946 = vmatpush3.bf16.msra.mxu1 %v5945_v20 }
0x166e   : > { %5947 = vmatprep.subr.bf16.mxu1 %v6331_v46 }
0x166f   : > { %p7425_p8 = scmp.ne.s32.totalorder %s7422_s1, 0 }
0x1671   : > { %5949 = vmatpush3.bf16.msra.mxu1 %v5948_v1  ;;  %p6241_p10 = pnand %p6240_p12, %p7425_p8 }
0x1672   : > { %5950 = vmatprep.subr.bf16.mxu1 %v6331_v46 }
0x1673   : > { %p6242_p6 = pneg %p6241_p10 }
0x1675   : > { %5952 = vmatpush3.bf16.msra.mxu1 %v5951_v3  ;;  %p6249_p1 = pnand %p6248_p5, %p6242_p6 }
0x173b   : > { %v4838_v5 = vpop.f32.mrb[40].mxu1 }
0x173c   : > { %v4839_v6 = vadd.f32 %v5412_v4, %v4838_v5  ;;  %v5835_v7 = vpop.f32.mrb[41].mxu1 }
0x173e   : > { %v4843_v9 = vmul.f32 0.70710677, %v4839_v6  ;;  %v4842_v12 = vmul.f32 0.5, %v4839_v6 }
0x1740   : > { %6117 = verf.f32 %v4843_v9 }
0x174a   : > { %v6118_v11 = vpop.eup %6117 }
0x174b   : > { %v4845_v14 = vadd.f32 1.0, %v6118_v11 }
0x174d   : > { %v4846_v15 = vmul.f32 %v4845_v14, %v4842_v12 }
0x174f   : > { %5853 = vmatmul.mubr.msk.f32.vlgmr.msra.gmra.mrb[42].mxu1 %vm2739_vm5, %v4846_v15 }
0x1822   : > { %v4931_v17 = vpop.f32.mrb[42].mxu1 }
0x1823   : > { %v4932_v18 = vadd.f32 %v5414_v16, %v4931_v17  ;;  %v5854_v19 = vpop.f32.mrb[43].mxu1 }
0x1825   : > { %4935 = vst [vmem:[%s969_s12] sm:$0x3] %v4932_v18 }
0x1826   : > { %6252 = shalt.err (!%p6249_p1)
}
0x1827   : > { %s6253_s15 = scalar_lea.hbm %s7275_s13, 32  ;;  %s6257_s20 = scalar_lea.hbm %s7424_s28, 64 }
0x1828   : > { %p6254_p7 = scmp.ne.s32.totalorder %s7275_s13, %s6253_s15  ;;  %p6258_p2 = scmp.lt.u32.totalorder %s7275_s13, %s7424_s28 }
0x1829   : > { %p6259_p9 = scmp.lt.u32.totalorder %s6257_s20, %s6253_s15  ;;  %p6261_p12 = scmp.lt.u32.totalorder %s6253_s15, %s7275_s13 }
0x182a   : > { %p6255_p0 = pnand %p6254_p7, %p7425_p8 }
0x182b   : > { %p6260_p13 = por %p6259_p9, %p6258_p2 }
0x182c   : > { %p6256_p11 = pneg %p6255_p0 }
0x182d   : > { %p6262_p10 = por %p6261_p12, %p6260_p13 }
0x182f   : > { %p6263_p6 = pnand %p6262_p10, %p6256_p11 }
0x1831   : > { %6266 = shalt.err (!%p6263_p6)
}
0x1832   : > { %5961 = dma.vmem_to_hbm [thread:$0]  (%p7425_p8), %s7277_s7, 32, %s7275_s13, %s4937_s25  }
0x1833 PF: > { %s7426_s4 = sld [smem:[#allocation15_spill]]  ;;  %s7427_s23 = sld [smem:[#allocation20_spill]] }
0x1834   : > { %p7429_p3 = scmp.ge.s32.totalorder %s6313_s24, 2 }
0x1839   : > { %s4962_s14 = sand.u32 1, %s7426_s4   ;;  %p7428_p4 = scmp.ne.s32.totalorder %s7427_s23, 0 }
0x183a   : > { %s4963_s26 = scalar_lea.sflag [#allocation4], %s4962_s14 }
0x183b   : > { %p5977_p5 = pnand %p7429_p3, %p7428_p4 }
0x183d   : > { %6296 = dma.done.wait (!%p5977_p5), %s4963_s26, 32  }
0x183e   : > { %6298 = vsyncadd (!%p5977_p5), %s4963_s26, 4294967264  ;;  %s7430_s24 = sld [smem:[#allocation17_spill]]  ;;  %s7431_s27 = sld [smem:[#allocation16_spill]] }
0x183f   : > { %s7432_s23 = sld [smem:[#allocation18_spill]]  ;;  %s7433_s1 = smov %s6305_s22 }
0x1844   : > { %p39_p1 = scmp.ge.s32.totalorder %s7430_s24, 4   ;;  %s7434_s22 = smov %s7431_s27 }
0x1846   :  { %41 = sbr.rel (!%p39_p1) target bundleno = 25 (0x19), region = 242 }
0x184d   :  { %4968 = vsyncpa [#allocation3], 1 }
0x184e   :  { %4970 = vsyncpa [#allocation3 + $0x1], 1 }
0x184f   :  { %4971 = vsyncpa [#allocation6], 1 }
0x1850   :  { %4973 = vsyncpa [#allocation6 + $0x1], 1 }
0x1851   :  { %4974 = vsyncpa [#allocation9], 1 }
0x1852   :  { %4976 = vsyncpa [#allocation9 + $0x1], 1 }
0x1853   :  { %4977 = vsyncpa [#allocation4], 1 }
0x1854   :  { %4979 = vsyncpa [#allocation4 + $0x1], 1 }

</bundles_post_ra>
